<compile_context>
chip_gen: v6e
topology: v6e:2x2x1
jax: 0.10.0
libtpu: 0.0.40
codegen_flags: <defaults>
</compile_context>

<pallas_src>
import jax
import jax.numpy as jnp
from jax import lax
from jax.experimental import pallas as pl
from jax.experimental.pallas import tpu as pltpu

EPS = 1e-5  # PyTorch InstanceNorm2d default (affine=False, biased variance)


def _resblock_kernel(x_ref, a1_ref, b1_ref, a2_ref, b2_ref, p_ref,
                     srow_ref, erow_ref, out_ref, pad_ref):
    nb, h, wc = x_ref.shape
    s = h + 2                       # per-image row stride in the padded scratch
    m = pad_ref.shape[0] - 2        # rows fed to / produced by each conv matmul
    mxu_dtype = a1_ref.dtype

    # ---- stage the Nb-sample batch into one stacked, row-padded scratch ----
    # Zero only the 2*Nb halo rows; every interior row is fully overwritten.
    zrow = jnp.zeros((1, wc), pad_ref.dtype)
    for i in range(nb):
        pad_ref[i * s:i * s + 1, :] = zrow
        pad_ref[i * s + h + 1:i * s + h + 2, :] = zrow
    for i in range(nb):
        pad_ref[i * s + 1:i * s + 1 + h, :] = x_ref[i].astype(pad_ref.dtype)

    p_mat = p_ref[...]              # (WC, WC) per-channel mean/broadcast, /(H*W) folded in
    srow = srow_ref[...]            # (Nb, M)  sums each image's valid rows
    erow = erow_ref[...]            # (M, Nb)  expands per-image stats to rows (0 on junk rows)

    def conv3x3(a_ref, b_ref):
        # ONE MXU matmul per conv with M = Nb*(H+2)-2 and K = 3*WC:
        # the 3 vertical taps are K-concatenated from ref-sliced loads, the 3
        # horizontal taps + zero column padding are folded into the banded
        # weights host-side.  Junk rows between images are never read back.
        x3 = jnp.concatenate(
            [pad_ref[0:m, :], pad_ref[1:m + 1, :], pad_ref[2:m + 2, :]],
            axis=1)
        y = jnp.dot(x3.astype(mxu_dtype), a_ref[...],
                    preferred_element_type=jnp.float32)
        return y + b_ref[...]       # bias pre-tiled to lanes (f32)

    def instance_norm(y):
        # Per-image, per-channel InstanceNorm (two-pass, biased variance),
        # done entirely in f32 on the otherwise-idle MXU:
        #   srow  : per-image sum over the H valid rows          -> (Nb, WC)
        #   p_mat : per-channel sum over width, /(H*W), broadcast-> (Nb, WC)
        #   erow  : re-expand per-image stats to scratch rows; its junk rows
        #           are all-zero, so the normalized junk rows come out exactly
        #           0 (finite * 0) and the blanket store below keeps halos 0.
        mean_l = jnp.dot(jnp.dot(srow, y, preferred_element_type=jnp.float32),
                         p_mat, preferred_element_type=jnp.float32)
        d = y - jnp.dot(erow, mean_l, preferred_element_type=jnp.float32)
        var_l = jnp.dot(jnp.dot(srow, d * d, preferred_element_type=jnp.float32),
                        p_mat, preferred_element_type=jnp.float32)
        inv_l = jnp.dot(erow, lax.rsqrt(var_l + EPS),
                        preferred_element_type=jnp.float32)
        return d * inv_l

    # conv1 -> InstanceNorm -> ReLU, written back into the same padded scratch
    # with a single blanket store (junk rows are exactly 0 -> halos stay zero).
    z1 = jnp.maximum(instance_norm(conv3x3(a1_ref, b1_ref)), 0.0)
    pad_ref[1:m + 1, :] = z1.astype(pad_ref.dtype)

    # conv2 -> InstanceNorm -> residual add -> lane-dense per-image stores.
    z2 = instance_norm(conv3x3(a2_ref, b2_ref))
    for i in range(nb):
        out_ref[i] = (x_ref[i].astype(jnp.float32)
                      + z2[i * s:i * s + h, :]).astype(out_ref.dtype)


def _banded_weights(w_hwio, width):
    """Fold the 3 horizontal taps + zero column padding of a 3x3 'SAME' conv
    into banded matrices A[dy] of shape (W*Cin, W*Cout) so that, on lane-dense
    rows, out_row[h] = sum_dy padded_row[h+dy] @ A[dy].  Returned K-stacked as
    (3*W*Cin, W*Cout) (dy-major) to match the kernel's K-concatenated operand."""
    kh, kw, cin, cout = w_hwio.shape
    src = jnp.arange(width)[None, :, None]          # source column
    out = jnp.arange(width)[None, None, :]          # output column
    dx = jnp.arange(kw)[:, None, None]
    mask = (src == out + dx - 1).astype(w_hwio.dtype)            # (kw, W, W)
    a = jnp.einsum('xsw,yxio->ysiwo', mask, w_hwio)              # (kh, W, Cin, W, Cout)
    return a.reshape(kh * width * cin, width * cout)


def _pick_batch_block(n):
    # Largest divisor of n that still leaves >= 2 grid blocks (v7x has 2 TCs).
    cap = max(1, min(8, n // 2))
    for d in range(cap, 0, -1):
        if n % d == 0:
            return d
    return 1


def residual_block(x_nhwc, w1, b1, w2, b2, *,
                   mxu_dtype=jnp.bfloat16, batch_block=None):
    """x_nhwc: (N,H,W,C); w*: (3,3,Cin,Cout) HWIO; b*: (C,). Returns (N,H,W,C).

    mxu_dtype=bfloat16 (default) runs the conv matmuls at full MXU rate on
    v6e/v7x (norm math stays f32); pass jnp.float32 to reproduce the PyTorch
    module's numerics closely.
    """
    N, H, W, C = x_nhwc.shape
    WC = W * C
    if WC % 128 != 0:
        raise ValueError("lane-dense layout requires W*C to be a multiple of "
                         f"128, got W*C={WC}")
    nb = _pick_batch_block(N) if batch_block is None else batch_block
    if N % nb != 0:
        raise ValueError(f"batch_block={nb} must divide N={N}")
    S = H + 2
    M = nb * S - 2

    x2d = x_nhwc.reshape(N, H, WC)                      # contiguous -> free reshape

    # Banded, K-stacked conv weights, pre-cast once to the MXU dtype.
    a1 = _banded_weights(w1, W).astype(mxu_dtype)       # (3*WC, WC)
    a2 = _banded_weights(w2, W).astype(mxu_dtype)
    b1l = jnp.tile(b1, W).reshape(1, WC).astype(jnp.float32)
    b2l = jnp.tile(b2, W).reshape(1, WC).astype(jnp.float32)
    # Fused InstanceNorm selector: per-channel sum over width and /(H*W),
    # broadcast back to lanes -- one (WC, WC) matmul instead of two.
    p_mat = jnp.tile(jnp.eye(C, dtype=jnp.float32), (W, W)) / float(H * W)
    # Per-image row selectors over the stacked scratch (junk rows masked out).
    r_idx = jnp.arange(M)
    valid = (r_idx % S) < H
    srow = ((r_idx[None, :] // S == jnp.arange(nb)[:, None])
            & valid[None, :]).astype(jnp.float32)       # (nb, M)
    erow = srow.T                                       # (M, nb)

    grid_spec = pltpu.PrefetchScalarGridSpec(
        num_scalar_prefetch=0,
        grid=(N // nb,),
        in_specs=[
            pl.BlockSpec((nb, H, WC), lambda n: (n, 0, 0)),
            # Constant-index weights/selectors: same block every step.
            # TODO(synk): at production C add pipeline_mode=pl.Buffered(1) on
            # these and re-size vmem_limit_bytes for v7x's 64 MiB VMEM.
            pl.BlockSpec((3 * WC, WC), lambda n: (0, 0)),
            pl.BlockSpec((1, WC), lambda n: (0, 0)),
            pl.BlockSpec((3 * WC, WC), lambda n: (0, 0)),
            pl.BlockSpec((1, WC), lambda n: (0, 0)),
            pl.BlockSpec((WC, WC), lambda n: (0, 0)),
            pl.BlockSpec((nb, M), lambda n: (0, 0)),
            pl.BlockSpec((M, nb), lambda n: (0, 0)),
        ],
        out_specs=pl.BlockSpec((nb, H, WC), lambda n: (n, 0, 0)),
        scratch_shapes=[pltpu.VMEM((nb * S, WC), jnp.float32)],  # stacked padded scratch
    )
    out2d = pl.pallas_call(
        _resblock_kernel,
        out_shape=jax.ShapeDtypeStruct((N, H, WC), x_nhwc.dtype),
        grid_spec=grid_spec,
        compiler_params=pltpu.CompilerParams(
            dimension_semantics=("parallel",),          # batch axis -> 2 TCs on v7x
            vmem_limit_bytes=32 * 1024 * 1024),
    )(x2d, a1, b1l, a2, b2l, p_mat, srow, erow)
    return out2d.reshape(N, H, W, C)


if __name__ == "__main__":
    key = jax.random.PRNGKey(0)
    N, C, Hs, Ws = 4, 8, 16, 16                         # W*C = 128 -> lane-dense
    k = jax.random.split(key, 5)

    x = jax.random.normal(k[0], (N, Hs, Ws, C), jnp.float32)
    # Deterministic Conv2d-style init (uniform in +-1/sqrt(fan_in)).
    bound = 1.0 / ((C * 3 * 3) ** 0.5)
    w1 = jax.random.uniform(k[1], (3, 3, C, C), jnp.float32, -bound, bound)
    b1 = jax.random.uniform(k[2], (C,), jnp.float32, -bound, bound)
    w2 = jax.random.uniform(k[3], (3, 3, C, C), jnp.float32, -bound, bound)
    b2 = jax.random.uniform(k[4], (C,), jnp.float32, -bound, bound)

    # Pure-JAX reference (same math as the PyTorch module).
    def conv_ref(y, w, b):
        return lax.conv_general_dilated(
            y, w, (1, 1), "SAME",
            dimension_numbers=("NHWC", "HWIO", "NHWC"),
            precision=lax.Precision.HIGHEST) + b.reshape(1, 1, 1, -1)

    def inorm_ref(y):
        mu = jnp.mean(y, axis=(1, 2), keepdims=True)
        va = jnp.mean((y - mu) ** 2, axis=(1, 2), keepdims=True)
        return (y - mu) * lax.rsqrt(va + EPS)

    ref = x + inorm_ref(conv_ref(jnp.maximum(inorm_ref(conv_ref(x, w1, b1)), 0.0),
                                 w2, b2))

    # Default (bf16 MXU) path: conv inputs rounded to bf16, norm math in f32.
    out_bf16 = jax.block_until_ready(residual_block(x, w1, b1, w2, b2))
    assert out_bf16.shape == (N, Hs, Ws, C)
    err_bf16 = float(jnp.max(jnp.abs(out_bf16 - ref)))
    assert err_bf16 < 0.25, f"bf16 path max abs err {err_bf16}"

    # Exact f32 MXU path matches the module numerics tightly.
    out_f32 = jax.block_until_ready(
        residual_block(x, w1, b1, w2, b2, mxu_dtype=jnp.float32))
    err_f32 = float(jnp.max(jnp.abs(out_f32 - ref)))
    assert jnp.allclose(out_f32, ref, atol=5e-4, rtol=5e-4), err_f32

    print("KERNEL_OK")
</pallas_src>

<mosaic_0001>
module attributes {stable_mosaic.version = 11 : i64} {
  func.func @_resblock_kernel(%arg0: i32, %arg1: memref<2x16x128xf32, #tpu.memory_space<vmem>>, %arg2: memref<384x128xbf16, #tpu.memory_space<vmem>>, %arg3: memref<1x128xf32, #tpu.memory_space<vmem>>, %arg4: memref<384x128xbf16, #tpu.memory_space<vmem>>, %arg5: memref<1x128xf32, #tpu.memory_space<vmem>>, %arg6: memref<128x128xf32, #tpu.memory_space<vmem>>, %arg7: memref<2x34xf32, #tpu.memory_space<vmem>>, %arg8: memref<34x2xf32, #tpu.memory_space<vmem>>, %arg9: memref<2x16x128xf32, #tpu.memory_space<vmem>>, %arg10: memref<36x128xf32, #tpu.memory_space<vmem>>) attributes {dimension_semantics = [#tpu.dimension_semantics<parallel>], iteration_bounds = array<i64: 2>, scalar_prefetch = 0 : i64, scratch_operands = 1 : i64, tpu.core_type = #tpu.core_type<tc>, window_params = [{transform_indices = @transform_0, window_bounds = array<i64: 2, 16, 128>}, {pipeline_mode = #tpu.pipeline_mode<synchronous>, transform_indices = @transform_1, window_bounds = array<i64: 384, 128>}, {pipeline_mode = #tpu.pipeline_mode<synchronous>, transform_indices = @transform_2, window_bounds = array<i64: 1, 128>}, {pipeline_mode = #tpu.pipeline_mode<synchronous>, transform_indices = @transform_3, window_bounds = array<i64: 384, 128>}, {pipeline_mode = #tpu.pipeline_mode<synchronous>, transform_indices = @transform_4, window_bounds = array<i64: 1, 128>}, {pipeline_mode = #tpu.pipeline_mode<synchronous>, transform_indices = @transform_5, window_bounds = array<i64: 128, 128>}, {pipeline_mode = #tpu.pipeline_mode<synchronous>, transform_indices = @transform_6, window_bounds = array<i64: 2, 34>}, {pipeline_mode = #tpu.pipeline_mode<synchronous>, transform_indices = @transform_7, window_bounds = array<i64: 34, 2>}, {transform_indices = @transform_8, window_bounds = array<i64: 2, 16, 128>}]} {
    %cst = arith.constant 0.000000e+00 : f32
    %0 = vector.broadcast %cst : f32 to vector<1x128xf32>
    %c0 = arith.constant 0 : index
    %c0_0 = arith.constant 0 : index
    %1 = vector.load %arg10[%c0, %c0_0] : memref<36x128xf32, #tpu.memory_space<vmem>>, vector<1x128xf32>
    tpu.vector_store %arg10[%c0, %c0_0], %0 {strides = array<i32>} : memref<36x128xf32, #tpu.memory_space<vmem>>, vector<1x128xf32>,
    %c17 = arith.constant 17 : index
    %c0_1 = arith.constant 0 : index
    %2 = vector.load %arg10[%c17, %c0_1] : memref<36x128xf32, #tpu.memory_space<vmem>>, vector<1x128xf32>
    tpu.vector_store %arg10[%c17, %c0_1], %0 {strides = array<i32>} : memref<36x128xf32, #tpu.memory_space<vmem>>, vector<1x128xf32>,
    %c18 = arith.constant 18 : index
    %c0_2 = arith.constant 0 : index
    %3 = vector.load %arg10[%c18, %c0_2] : memref<36x128xf32, #tpu.memory_space<vmem>>, vector<1x128xf32>
    tpu.vector_store %arg10[%c18, %c0_2], %0 {strides = array<i32>} : memref<36x128xf32, #tpu.memory_space<vmem>>, vector<1x128xf32>,
    %c35 = arith.constant 35 : index
    %c0_3 = arith.constant 0 : index
    %4 = vector.load %arg10[%c35, %c0_3] : memref<36x128xf32, #tpu.memory_space<vmem>>, vector<1x128xf32>
    tpu.vector_store %arg10[%c35, %c0_3], %0 {strides = array<i32>} : memref<36x128xf32, #tpu.memory_space<vmem>>, vector<1x128xf32>,
    %c0_4 = arith.constant 0 : index
    %c0_5 = arith.constant 0 : index
    %c0_6 = arith.constant 0 : index
    %5 = vector.load %arg1[%c0_4, %c0_5, %c0_6] : memref<2x16x128xf32, #tpu.memory_space<vmem>>, vector<1x16x128xf32>
    %6 = vector.shape_cast %5 : vector<1x16x128xf32> to vector<16x128xf32>
    %c1 = arith.constant 1 : index
    %c0_7 = arith.constant 0 : index
    %7 = vector.load %arg10[%c1, %c0_7] : memref<36x128xf32, #tpu.memory_space<vmem>>, vector<16x128xf32>
    tpu.vector_store %arg10[%c1, %c0_7], %6 {strides = array<i32>} : memref<36x128xf32, #tpu.memory_space<vmem>>, vector<16x128xf32>,
    %c1_8 = arith.constant 1 : index
    %c0_9 = arith.constant 0 : index
    %c0_10 = arith.constant 0 : index
    %8 = vector.load %arg1[%c1_8, %c0_9, %c0_10] : memref<2x16x128xf32, #tpu.memory_space<vmem>>, vector<1x16x128xf32>
    %9 = vector.shape_cast %8 : vector<1x16x128xf32> to vector<16x128xf32>
    %c19 = arith.constant 19 : index
    %c0_11 = arith.constant 0 : index
    %10 = vector.load %arg10[%c19, %c0_11] : memref<36x128xf32, #tpu.memory_space<vmem>>, vector<16x128xf32>
    tpu.vector_store %arg10[%c19, %c0_11], %9 {strides = array<i32>} : memref<36x128xf32, #tpu.memory_space<vmem>>, vector<16x128xf32>,
    %c0_12 = arith.constant 0 : index
    %c0_13 = arith.constant 0 : index
    %11 = vector.load %arg6[%c0_12, %c0_13] : memref<128x128xf32, #tpu.memory_space<vmem>>, vector<128x128xf32>
    %c0_14 = arith.constant 0 : index
    %c0_15 = arith.constant 0 : index
    %12 = vector.load %arg7[%c0_14, %c0_15] : memref<2x34xf32, #tpu.memory_space<vmem>>, vector<2x34xf32>
    %c0_16 = arith.constant 0 : index
    %c0_17 = arith.constant 0 : index
    %13 = vector.load %arg8[%c0_16, %c0_17] : memref<34x2xf32, #tpu.memory_space<vmem>>, vector<34x2xf32>
    %c0_18 = arith.constant 0 : index
    %c0_19 = arith.constant 0 : index
    %14 = vector.load %arg10[%c0_18, %c0_19] : memref<36x128xf32, #tpu.memory_space<vmem>>, vector<34x128xf32>
    %c1_20 = arith.constant 1 : index
    %c0_21 = arith.constant 0 : index
    %15 = vector.load %arg10[%c1_20, %c0_21] : memref<36x128xf32, #tpu.memory_space<vmem>>, vector<34x128xf32>
    %c2 = arith.constant 2 : index
    %c0_22 = arith.constant 0 : index
    %16 = vector.load %arg10[%c2, %c0_22] : memref<36x128xf32, #tpu.memory_space<vmem>>, vector<34x128xf32>
    %17 = tpu.concatenate %14, %15, %16 in 1 : vector<34x128xf32>, vector<34x128xf32>, vector<34x128xf32> -> vector<34x384xf32>
    %18 = arith.truncf %17 : vector<34x384xf32> to vector<34x384xbf16>
    %c0_23 = arith.constant 0 : index
    %c0_24 = arith.constant 0 : index
    %19 = vector.load %arg2[%c0_23, %c0_24] : memref<384x128xbf16, #tpu.memory_space<vmem>>, vector<384x128xbf16>
    %cst_25 = arith.constant dense<0.000000e+00> : vector<34x128xf32>
    %20 = tpu.matmul %18, %19, %cst_25 {dimension_numbers = #tpu.dot_dimension_numbers<[1], [0], [0], [1], [0, 0, 1, 1], [], []>} : vector<34x384xbf16>, vector<384x128xbf16>, vector<34x128xf32> -> vector<34x128xf32>
    %c0_26 = arith.constant 0 : index
    %c0_27 = arith.constant 0 : index
    %21 = vector.load %arg3[%c0_26, %c0_27] : memref<1x128xf32, #tpu.memory_space<vmem>>, vector<1x128xf32>
    %22 = vector.broadcast %21 : vector<1x128xf32> to vector<34x128xf32>
    %23 = arith.addf %20, %22 : vector<34x128xf32>
    %cst_28 = arith.constant dense<0.000000e+00> : vector<2x128xf32>
    %24 = tpu.matmul %12, %23, %cst_28 {dimension_numbers = #tpu.dot_dimension_numbers<[1], [0], [0], [1], [0, 0, 1, 1], [], []>} : vector<2x34xf32>, vector<34x128xf32>, vector<2x128xf32> -> vector<2x128xf32>
    %cst_29 = arith.constant dense<0.000000e+00> : vector<2x128xf32>
    %25 = tpu.matmul %24, %11, %cst_29 {dimension_numbers = #tpu.dot_dimension_numbers<[1], [0], [0], [1], [0, 0, 1, 1], [], []>} : vector<2x128xf32>, vector<128x128xf32>, vector<2x128xf32> -> vector<2x128xf32>
    %cst_30 = arith.constant dense<0.000000e+00> : vector<34x128xf32>
    %26 = tpu.matmul %13, %25, %cst_30 {dimension_numbers = #tpu.dot_dimension_numbers<[1], [0], [0], [1], [0, 0, 1, 1], [], []>} : vector<34x2xf32>, vector<2x128xf32>, vector<34x128xf32> -> vector<34x128xf32>
    %27 = arith.subf %23, %26 : vector<34x128xf32>
    %28 = arith.mulf %27, %27 : vector<34x128xf32>
    %cst_31 = arith.constant dense<0.000000e+00> : vector<2x128xf32>
    %29 = tpu.matmul %12, %28, %cst_31 {dimension_numbers = #tpu.dot_dimension_numbers<[1], [0], [0], [1], [0, 0, 1, 1], [], []>} : vector<2x34xf32>, vector<34x128xf32>, vector<2x128xf32> -> vector<2x128xf32>
    %cst_32 = arith.constant dense<0.000000e+00> : vector<2x128xf32>
    %30 = tpu.matmul %29, %11, %cst_32 {dimension_numbers = #tpu.dot_dimension_numbers<[1], [0], [0], [1], [0, 0, 1, 1], [], []>} : vector<2x128xf32>, vector<128x128xf32>, vector<2x128xf32> -> vector<2x128xf32>
    %cst_33 = arith.constant 9.99999974E-6 : f32
    %31 = vector.broadcast %cst_33 : f32 to vector<2x128xf32>
    %32 = arith.addf %30, %31 : vector<2x128xf32>
    %33 = math.rsqrt %32 : vector<2x128xf32>
    %cst_34 = arith.constant dense<0.000000e+00> : vector<34x128xf32>
    %34 = tpu.matmul %13, %33, %cst_34 {dimension_numbers = #tpu.dot_dimension_numbers<[1], [0], [0], [1], [0, 0, 1, 1], [], []>} : vector<34x2xf32>, vector<2x128xf32>, vector<34x128xf32> -> vector<34x128xf32>
    %35 = arith.mulf %27, %34 : vector<34x128xf32>
    %cst_35 = arith.constant 0.000000e+00 : f32
    %36 = vector.broadcast %cst_35 : f32 to vector<34x128xf32>
    %37 = arith.maximumf %35, %36 : vector<34x128xf32>
    %c1_36 = arith.constant 1 : index
    %c0_37 = arith.constant 0 : index
    %38 = vector.load %arg10[%c1_36, %c0_37] : memref<36x128xf32, #tpu.memory_space<vmem>>, vector<34x128xf32>
    tpu.vector_store %arg10[%c1_36, %c0_37], %37 {strides = array<i32>} : memref<36x128xf32, #tpu.memory_space<vmem>>, vector<34x128xf32>,
    %c0_38 = arith.constant 0 : index
    %c0_39 = arith.constant 0 : index
    %39 = vector.load %arg10[%c0_38, %c0_39] : memref<36x128xf32, #tpu.memory_space<vmem>>, vector<34x128xf32>
    %c1_40 = arith.constant 1 : index
    %c0_41 = arith.constant 0 : index
    %40 = vector.load %arg10[%c1_40, %c0_41] : memref<36x128xf32, #tpu.memory_space<vmem>>, vector<34x128xf32>
    %c2_42 = arith.constant 2 : index
    %c0_43 = arith.constant 0 : index
    %41 = vector.load %arg10[%c2_42, %c0_43] : memref<36x128xf32, #tpu.memory_space<vmem>>, vector<34x128xf32>
    %42 = tpu.concatenate %39, %40, %41 in 1 : vector<34x128xf32>, vector<34x128xf32>, vector<34x128xf32> -> vector<34x384xf32>
    %43 = arith.truncf %42 : vector<34x384xf32> to vector<34x384xbf16>
    %c0_44 = arith.constant 0 : index
    %c0_45 = arith.constant 0 : index
    %44 = vector.load %arg4[%c0_44, %c0_45] : memref<384x128xbf16, #tpu.memory_space<vmem>>, vector<384x128xbf16>
    %cst_46 = arith.constant dense<0.000000e+00> : vector<34x128xf32>
    %45 = tpu.matmul %43, %44, %cst_46 {dimension_numbers = #tpu.dot_dimension_numbers<[1], [0], [0], [1], [0, 0, 1, 1], [], []>} : vector<34x384xbf16>, vector<384x128xbf16>, vector<34x128xf32> -> vector<34x128xf32>
    %c0_47 = arith.constant 0 : index
    %c0_48 = arith.constant 0 : index
    %46 = vector.load %arg5[%c0_47, %c0_48] : memref<1x128xf32, #tpu.memory_space<vmem>>, vector<1x128xf32>
    %47 = vector.broadcast %46 : vector<1x128xf32> to vector<34x128xf32>
    %48 = arith.addf %45, %47 : vector<34x128xf32>
    %cst_49 = arith.constant dense<0.000000e+00> : vector<2x128xf32>
    %49 = tpu.matmul %12, %48, %cst_49 {dimension_numbers = #tpu.dot_dimension_numbers<[1], [0], [0], [1], [0, 0, 1, 1], [], []>} : vector<2x34xf32>, vector<34x128xf32>, vector<2x128xf32> -> vector<2x128xf32>
    %cst_50 = arith.constant dense<0.000000e+00> : vector<2x128xf32>
    %50 = tpu.matmul %49, %11, %cst_50 {dimension_numbers = #tpu.dot_dimension_numbers<[1], [0], [0], [1], [0, 0, 1, 1], [], []>} : vector<2x128xf32>, vector<128x128xf32>, vector<2x128xf32> -> vector<2x128xf32>
    %cst_51 = arith.constant dense<0.000000e+00> : vector<34x128xf32>
    %51 = tpu.matmul %13, %50, %cst_51 {dimension_numbers = #tpu.dot_dimension_numbers<[1], [0], [0], [1], [0, 0, 1, 1], [], []>} : vector<34x2xf32>, vector<2x128xf32>, vector<34x128xf32> -> vector<34x128xf32>
    %52 = arith.subf %48, %51 : vector<34x128xf32>
    %53 = arith.mulf %52, %52 : vector<34x128xf32>
    %cst_52 = arith.constant dense<0.000000e+00> : vector<2x128xf32>
    %54 = tpu.matmul %12, %53, %cst_52 {dimension_numbers = #tpu.dot_dimension_numbers<[1], [0], [0], [1], [0, 0, 1, 1], [], []>} : vector<2x34xf32>, vector<34x128xf32>, vector<2x128xf32> -> vector<2x128xf32>
    %cst_53 = arith.constant dense<0.000000e+00> : vector<2x128xf32>
    %55 = tpu.matmul %54, %11, %cst_53 {dimension_numbers = #tpu.dot_dimension_numbers<[1], [0], [0], [1], [0, 0, 1, 1], [], []>} : vector<2x128xf32>, vector<128x128xf32>, vector<2x128xf32> -> vector<2x128xf32>
    %cst_54 = arith.constant 9.99999974E-6 : f32
    %56 = vector.broadcast %cst_54 : f32 to vector<2x128xf32>
    %57 = arith.addf %55, %56 : vector<2x128xf32>
    %58 = math.rsqrt %57 : vector<2x128xf32>
    %cst_55 = arith.constant dense<0.000000e+00> : vector<34x128xf32>
    %59 = tpu.matmul %13, %58, %cst_55 {dimension_numbers = #tpu.dot_dimension_numbers<[1], [0], [0], [1], [0, 0, 1, 1], [], []>} : vector<34x2xf32>, vector<2x128xf32>, vector<34x128xf32> -> vector<34x128xf32>
    %60 = arith.mulf %52, %59 : vector<34x128xf32>
    %c0_56 = arith.constant 0 : index
    %c0_57 = arith.constant 0 : index
    %c0_58 = arith.constant 0 : index
    %61 = vector.load %arg1[%c0_56, %c0_57, %c0_58] : memref<2x16x128xf32, #tpu.memory_space<vmem>>, vector<1x16x128xf32>
    %62 = vector.shape_cast %61 : vector<1x16x128xf32> to vector<16x128xf32>
    %63 = vector.extract_strided_slice %60 {offsets = [0, 0], sizes = [16, 128], strides = [1, 1]} : vector<34x128xf32> to vector<16x128xf32>
    %64 = arith.addf %62, %63 : vector<16x128xf32>
    %c0_59 = arith.constant 0 : index
    %c0_60 = arith.constant 0 : index
    %c0_61 = arith.constant 0 : index
    %65 = vector.load %arg9[%c0_59, %c0_60, %c0_61] : memref<2x16x128xf32, #tpu.memory_space<vmem>>, vector<1x16x128xf32>
    %66 = vector.shape_cast %65 : vector<1x16x128xf32> to vector<16x128xf32>
    %67 = vector.shape_cast %64 : vector<16x128xf32> to vector<1x16x128xf32>
    tpu.vector_store %arg9[%c0_59, %c0_60, %c0_61], %67 {strides = array<i32>} : memref<2x16x128xf32, #tpu.memory_space<vmem>>, vector<1x16x128xf32>,
    %c1_62 = arith.constant 1 : index
    %c0_63 = arith.constant 0 : index
    %c0_64 = arith.constant 0 : index
    %68 = vector.load %arg1[%c1_62, %c0_63, %c0_64] : memref<2x16x128xf32, #tpu.memory_space<vmem>>, vector<1x16x128xf32>
    %69 = vector.shape_cast %68 : vector<1x16x128xf32> to vector<16x128xf32>
    %70 = vector.extract_strided_slice %60 {offsets = [18, 0], sizes = [16, 128], strides = [1, 1]} : vector<34x128xf32> to vector<16x128xf32>
    %71 = arith.addf %69, %70 : vector<16x128xf32>
    %c1_65 = arith.constant 1 : index
    %c0_66 = arith.constant 0 : index
    %c0_67 = arith.constant 0 : index
    %72 = vector.load %arg9[%c1_65, %c0_66, %c0_67] : memref<2x16x128xf32, #tpu.memory_space<vmem>>, vector<1x16x128xf32>
    %73 = vector.shape_cast %72 : vector<1x16x128xf32> to vector<16x128xf32>
    %74 = vector.shape_cast %71 : vector<16x128xf32> to vector<1x16x128xf32>
    tpu.vector_store %arg9[%c1_65, %c0_66, %c0_67], %74 {strides = array<i32>} : memref<2x16x128xf32, #tpu.memory_space<vmem>>, vector<1x16x128xf32>,
    return
  }
  func.func @transform_0(%arg0: i32) -> (i32, i32, i32) {
    %c0_i32 = arith.constant 0 : i32
    %c0_i32_0 = arith.constant 0 : i32
    %c0_i32_1 = arith.constant 0 : i32
    return %arg0, %c0_i32, %c0_i32_0 : i32, i32, i32
  }
  func.func @transform_1(%arg0: i32) -> (i32, i32) {
    %c0_i32 = arith.constant 0 : i32
    %c0_i32_0 = arith.constant 0 : i32
    %c0_i32_1 = arith.constant 0 : i32
    return %c0_i32, %c0_i32_0 : i32, i32
  }
  func.func @transform_2(%arg0: i32) -> (i32, i32) {
    %c0_i32 = arith.constant 0 : i32
    %c0_i32_0 = arith.constant 0 : i32
    %c0_i32_1 = arith.constant 0 : i32
    return %c0_i32, %c0_i32_0 : i32, i32
  }
  func.func @transform_3(%arg0: i32) -> (i32, i32) {
    %c0_i32 = arith.constant 0 : i32
    %c0_i32_0 = arith.constant 0 : i32
    %c0_i32_1 = arith.constant 0 : i32
    return %c0_i32, %c0_i32_0 : i32, i32
  }
  func.func @transform_4(%arg0: i32) -> (i32, i32) {
    %c0_i32 = arith.constant 0 : i32
    %c0_i32_0 = arith.constant 0 : i32
    %c0_i32_1 = arith.constant 0 : i32
    return %c0_i32, %c0_i32_0 : i32, i32
  }
  func.func @transform_5(%arg0: i32) -> (i32, i32) {
    %c0_i32 = arith.constant 0 : i32
    %c0_i32_0 = arith.constant 0 : i32
    %c0_i32_1 = arith.constant 0 : i32
    return %c0_i32, %c0_i32_0 : i32, i32
  }
  func.func @transform_6(%arg0: i32) -> (i32, i32) {
    %c0_i32 = arith.constant 0 : i32
    %c0_i32_0 = arith.constant 0 : i32
    %c0_i32_1 = arith.constant 0 : i32
    return %c0_i32, %c0_i32_0 : i32, i32
  }
  func.func @transform_7(%arg0: i32) -> (i32, i32) {
    %c0_i32 = arith.constant 0 : i32
    %c0_i32_0 = arith.constant 0 : i32
    %c0_i32_1 = arith.constant 0 : i32
    return %c0_i32, %c0_i32_0 : i32, i32
  }
  func.func @transform_8(%arg0: i32) -> (i32, i32, i32) {
    %c0_i32 = arith.constant 0 : i32
    %c0_i32_0 = arith.constant 0 : i32
    %c0_i32_1 = arith.constant 0 : i32
    return %arg0, %c0_i32, %c0_i32_0 : i32, i32, i32
  }
}

</mosaic_0001>

<bundles_post_ra>
// kernel: tpu_custom_call.1
= control target key start
LH: loop header
LB: loop body
LE: loop exit
PB: predicated region body
PF: predicated region fallthrough
CT: control target
= control target key end

     0   :  { %s3899_s0 = inlined_call_operand.hbm [shape: f32[4,16,128], index: 0, kind: input, shape index: {}]   ;;  %s3900_s1 = inlined_call_operand.hbm [shape: bf16[384,128], index: 1, kind: input, shape index: {}]   ;;  %s3901_s2 = inlined_call_operand.vmem [shape: f32[1,128], index: 2, kind: input, shape index: {}]   ;;  %s3902_s3 = inlined_call_operand.hbm [shape: bf16[384,128], index: 3, kind: input, shape index: {}]   ;;  %s3903_s4 = inlined_call_operand.vmem [shape: f32[1,128], index: 4, kind: input, shape index: {}]   ;;  %s3904_s5 = inlined_call_operand.hbm [shape: f32[128,128], index: 5, kind: input, shape index: {}]   ;;  %s3905_s6 = inlined_call_operand.vmem [shape: f32[2,34], index: 6, kind: input, shape index: {}]   ;;  %s3906_s7 = inlined_call_operand.vmem [shape: f32[34,2], index: 7, kind: input, shape index: {}]   ;;  %s3907_s8 = inlined_call_operand.hbm [shape: f32[4,16,128], index: 8, kind: output, shape index: {}]  }
   0x1   :  { %3914 = sst [smem:[#allocation16_spill]] %s3900_s1 }
   0x2   :  { %3915 = sst [smem:[#allocation17_spill]] %s3902_s3 }
   0x3   :  { %13 = vsyncpa [#allocation4], 0 }
   0x4   :  { %15 = vsyncpa [#allocation4 + $0x1], 0 }
   0x5   :  { %16 = vsyncpa [#allocation7], 0 }
   0x6   :  { %17 = vsyncpa [#allocation10], 0 }
   0x7   :  { %18 = vsyncpa [#allocation5], 0 }
   0x8   :  { %20 = vsyncpa [#allocation5 + $0x1], 0  ;;  %s3236_s27 = smov 0   ;;  %s3238_s28 = smov 0  }
   0x9   :  { %s3240_s29 = smov 0   ;;  %s3242_s30 = smov 0  }
   0xa LB: > { %s3257_s9 = sadd.s32 4294967295, %s3176_s30   ;;  %s2225_s10 = sadd.s32 4294967294, %s3176_s30   ;;  %s3176_s30 = sphi %s3242_s30, %s3939_s30   ;;  %s3172_s29 = sphi %s3240_s29, %s3938_s29   ;;  %s3168_s28 = sphi %s3238_s28, %s3937_s28   ;;  %s3164_s27 = sphi %s3236_s27, %s3936_s27  }
   0xb   : > { %p46_p0 = scmp.ne.s32.totalorder %s3168_s28, %s3164_s27  ;;  %p3908_p1 = scmp.eq.s32.totalorder %s3257_s9, 0 }
   0xc   : > { %p223_p3 = scmp.eq.s32.totalorder %s2225_s10, 1  ;;  %p2226_p5 = scmp.ge.s32.totalorder %s3176_s30, 1 }
   0xd   : > { %p3266_p4 = por %p3908_p1, %p46_p0  ;;  %p230_p7 = scmp.lt.s32.totalorder %s3176_s30, 3 }
   0xe   : > { %p3271_p6 = por %p223_p3, %p46_p0  ;;  %s3178_s14 = smov [#allocation6]  }
   0xf   : > { %s3916_s11 = scalar_select %p3266_p4, 1, 0 }
  0x10   : > { %s3917_s12 = scalar_select %p3271_p6, 1, 0 }
  0x11   : > { %p3276_p8 = pnand %p2226_p5, %p230_p7  ;;  %s242_s15 = sshll.u32 %s3178_s14, 4  ;;  %s243_s15 = int_to_ptr.vmem [resolvable:$true] %s242_s15 }
  0x12   : > { %s3179_s17 = smov [#allocation8]   ;;  %s3180_s19 = smov [#allocation9]  }
  0x13   : > { %s3918_s13 = scalar_select %p3276_p8, 1, 0 }
  0x14   : > { %p2877_p9 = pneg %p3276_p8  ;;  %s258_s18 = sshll.u32 %s3179_s17, 4  ;;  %s259_s18 = int_to_ptr.vmem [resolvable:$true] %s258_s18 }
  0x15   : > { %s274_s20 = sshll.u32 %s3180_s19, 4  ;;  %s3009_s21 = scalar_lea.vmem %s243_s15, 3072  ;;  %s275_s20 = int_to_ptr.vmem [resolvable:$true] %s274_s20 }
  0x16   : > { %p3285_p11 = pnand %p2877_p9, %p3908_p1  ;;  %p3010_p13 = scmp.ne.s32.totalorder %s243_s15, %s3009_s21 }
  0x17   : > { %p3017_p5 = scmp.lt.s32.totalorder %s243_s15, %s243_s15  ;;  %p3018_p7 = scmp.lt.s32.totalorder %s3009_s21, %s3009_s21 }
  0x18   : > { %p3000_p12 = pneg %p3285_p11 }
  0x19   : > { %p3019_p9 = por %p3018_p7, %p3017_p5 }
  0x1a   : > { %p3012_p0 = pnand %p3010_p13, %p3000_p12 }
  0x1c   : > { %p3013_p3 = pneg %p3012_p0 }
  0x1e   : > { %p3020_p10 = pnand %p3019_p9, %p3013_p3 }
  0x20   : > { %3023 = shalt.err (!%p3020_p10)
}
  0x21   : > { %s3181_s22 = smov 64   ;;  %s3182_s23 = smov 4  }
  0x22   : > { %s3920_s1 = sld [smem:[#allocation16_spill]]  ;;  %s3035_s26 = scalar_lea.vmem %s259_s18, 3072 }
  0x23   : > { %p3036_p1 = scmp.ne.s32.totalorder %s259_s18, %s3035_s26  ;;  %p3043_p2 = scmp.lt.s32.totalorder %s259_s18, %s259_s18 }
  0x24   : > { %p3044_p6 = scmp.lt.s32.totalorder %s3035_s26, %s3035_s26 }
  0x25   : > { %p3038_p13 = pnand %p3036_p1, %p3000_p12 }
  0x26   : > { %p3045_p5 = por %p3044_p6, %p3043_p2 }
  0x27   : > { %p3039_p0 = pneg %p3038_p13 }
  0x28   : > { %2880 = dma.hbm_to_vmem [thread:$0]  (!%p3285_p11), %s3920_s1, 3072, %s243_s15, [#allocation7], %s3181_s22, %s3181_s22, %s3182_s23  }
  0x29   : > { %p3046_p3 = pnand %p3045_p5, %p3039_p0 }
  0x2b   : > { %3049 = shalt.err (!%p3046_p3)
}
  0x2c   : > { %s3921_s3 = sld [smem:[#allocation17_spill]]  ;;  %s3061_s15 = scalar_lea.vmem %s275_s20, 2048 }
  0x2d   : > { %p3062_p10 = scmp.ne.s32.totalorder %s275_s20, %s3061_s15  ;;  %p3069_p9 = scmp.lt.s32.totalorder %s275_s20, %s275_s20 }
  0x2e   : > { %p3070_p13 = scmp.lt.s32.totalorder %s3061_s15, %s3061_s15 }
  0x2f   : > { %p3064_p7 = pnand %p3062_p10, %p3000_p12 }
  0x30   : > { %p3071_p4 = por %p3070_p13, %p3069_p9 }
  0x31   : > { %p3065_p1 = pneg %p3064_p7 }
  0x32   : > { %2883 = dma.hbm_to_vmem [thread:$0]  (!%p3285_p11), %s3921_s3, 3072, %s259_s18, [#allocation7], %s3181_s22, %s3181_s22, %s3182_s23  }
  0x33   : > { %p3072_p2 = pnand %p3071_p4, %p3065_p1 }
  0x35   : > { %3075 = shalt.err (!%p3072_p2)
}
  0x36   : > { %s3910_s17 = smov 128   ;;  %s3911_s18 = smov 8  }
  0x37   : > { %2886 = dma.hbm_to_vmem [thread:$0]  (!%p3285_p11), %s3904_s5, 2048, %s275_s20, [#allocation10], %s3910_s17, %s3910_s17, %s3911_s18  }
  0x38   : > { %s3319_s22 = sadd.s32 1, %s3176_s30   ;;  %s33_s24 = sadd.s32 1, %s3172_s29 }
  0x39   : > { %s30_s23 = ssub.s32 %s3176_s30, %s3319_s22  ;;  %p40_p6 = scmp.ne.s32.totalorder %s3172_s29, %s3168_s28 }
  0x3a   : > { %p31_p4 = scmp.eq.s32.totalorder %s30_s23, 0  ;;  %p41_p12 = scmp.eq.s32.totalorder %s3176_s30, 0 }
  0x3b   : > { %p2898_p0 = scmp.lt.s32.totalorder %s3176_s30, 2  ;;  %p3922_p3 = scmp.eq.s32.totalorder %s3257_s9, 1 }
  0x3c   : > { %s3329_s25 = scalar_select %p31_p4, %s3172_s29, %s33_s24  }
  0x3d   : > { %p42_p5 = por %p41_p12, %p40_p6  ;;  %p3333_p10 = por %p3922_p3, %p40_p6 }
  0x3e   : > { %s294_s26 = sand.u32 1, %s3172_s29   ;;  %s2336_s10 = sshll.u32 %s3176_s30, 9 }
  0x3f   : > { %s3923_s16 = scalar_select %p3333_p10, 1, 0 }
  0x40   : > { %s2231_s20 = sshll.u32 %s294_s26, 5  ;;  %s3342_s19 = scalar_lea.hbm %s3899_s0, %s2336_s10 }
  0x41   : > { %s298_s21 = scalar_lea.vmem [#allocation3], %s2231_s20  ;;  %p3344_p11 = pnand %p2898_p0, %p42_p5 }
  0x42   : > { %s306_s23 = sshll.u32 %s298_s21, 4  ;;  %s3350_s17 = scalar_lea.sflag [#allocation4], %s294_s26  ;;  %s3348_s23 = int_to_ptr.vmem [resolvable:$true] %s306_s23 }
  0x43   : > { %s3076_s18 = scalar_lea.hbm %s3342_s19, 512  ;;  %p3078_p1 = pneg %p3344_p11 }
  0x44   : > { %p3077_p7 = scmp.ne.s32.totalorder %s3342_s19, %s3076_s18  ;;  %s3081_s20 = scalar_lea.hbm %s3899_s0, 1024 }
  0x45   : > { %p3082_p2 = scmp.lt.s32.totalorder %s3342_s19, %s3899_s0  ;;  %p3083_p4 = scmp.lt.s32.totalorder %s3081_s20, %s3076_s18 }
  0x46   : > { %p3079_p9 = pnand %p3078_p1, %p3077_p7 }
  0x47   : > { %p3084_p6 = por %p3083_p4, %p3082_p2 }
  0x48   : > { %p3080_p13 = pneg %p3079_p9 }
  0x4a   : > { %p3085_p12 = pnand %p3084_p6, %p3080_p13 }
  0x4c   : > { %3088 = shalt.err (!%p3085_p12)
}
  0x4d   : > { %s3089_s26 = scalar_lea.vmem %s3348_s23, 512  ;;  %s3185_s1 = smov [#allocation3]  }
  0x4e   : > { %p3090_p0 = scmp.ne.s32.totalorder %s3348_s23, %s3089_s26  ;;  %s3094_s3 = sshll.u32 %s3185_s1, 4  ;;  %s3095_s3 = int_to_ptr.vmem [resolvable:$false] %s3094_s3 }
  0x4f   : > { %s3096_s10 = scalar_lea.vmem %s3095_s3, 1024  ;;  %p3097_p7 = scmp.lt.s32.totalorder %s3348_s23, %s3095_s3 }
  0x50   : > { %p3092_p5 = pnand %p3090_p0, %p3078_p1  ;;  %p3098_p9 = scmp.lt.s32.totalorder %s3096_s10, %s3089_s26 }
  0x52   : > { %p3093_p3 = pneg %p3092_p5  ;;  %p3099_p10 = por %p3098_p9, %p3097_p7 }
  0x54   : > { %p3100_p8 = pnand %p3099_p10, %p3093_p3 }
  0x56   : > { %3103 = shalt.err (!%p3100_p8)
}
  0x57   : > { %s3925_s18 = smov 8   ;;  %s3926_s14 = smov 128  }
  0x58   : > { %2890 = dma.hbm_to_vmem [thread:$0]  (!%p3344_p11), %s3342_s19, 512, %s3348_s23, %s3350_s17, %s3926_s14, %s3926_s14, %s3925_s18  }
  0x59   : > { %p3927_p1 = scmp.ne.s32.totalorder %s3918_s13, 0 }
  0x5a   : > { %s3377_s1 = sand.u32 (!%p3927_p1), 1, %s3168_s28   ;;  %p3928_p8 = scmp.ne.s32.totalorder (!%p3927_p1), %s3916_s11, 0 }
  0x5b   : > { %318 = sbr.rel (%p3927_p1) target bundleno = 3054 (0xbee), region = 52  ;;  %s2236_s3 = sshll.u32 (!%p3927_p1), %s3377_s1, 5 }
  0x5c   : > { %s321_s20 = scalar_lea.sflag (!%p3927_p1), [#allocation4], %s3377_s1  ;;  %s3383_s24 = scalar_lea.vmem (!%p3927_p1), [#allocation3], %s2236_s3 }
  0x60   : > { %3147 = dma.done.wait (%p3928_p8), %s321_s20, 512  }
  0x61   : > { %3149 = vsyncadd (%p3928_p8), %s321_s20, 4294966784  ;;  %p3929_p10 = scmp.eq.s32.totalorder %s3257_s9, 0 }
  0x63   : > { %3151 = dma.done.wait (%p3929_p10), [#allocation7], 6144   ;;  %p3930_p11 = pmov %p3929_p10 }
  0x64   : > { %p3931_p13 = pmov %p3929_p10 }
  0x65   : > { %3153 = vsyncadd (%p3930_p11), [#allocation7], 4294961152 }
  0x66   : > { %3155 = dma.done.wait (%p3931_p13), [#allocation10], 2048   ;;  %p3932_p2 = pmov %p3929_p10 }
  0x67   : > { %v3186_v0 = vmov 0.0   ;;  %vm3187_vm0 = vmmov 0   ;;  %v2946_v1 = vld [vmem:[#allocation6 + $0x78] sm:$0xff]   ;;  %v2949_v4 = vld [vmem:[#allocation6 + $0x70] sm:$0xff]   ;;  %v2952_v7 = vld [vmem:[#allocation6 + $0x68] sm:$0xff]   ;;  %vm746_vm1 = vcmask 1041408  }
  0x68   : > { %3157 = vsyncadd (%p3932_p2), [#allocation10], 4294965248  ;;  %2545 = vmatprep.subr.bf16.mxu1 %v3186_v0  ;;  %372 = vst [vmem:[#allocation2] sm:$0x1] %v3186_v0  ;;  %2561 = vmatprep.mubr.msk.bf16.mxu1 %vm3187_vm0, %v3186_v0  ;;  %v2947_v2 = vld [vmem:[#allocation6 + $0x38] sm:$0xff]   ;;  %v2950_v5 = vld [vmem:[#allocation6 + $0x30] sm:$0xff]  }
  0x69   : > { %373 = vst [vmem:[#allocation2 + $0x11] sm:$0x1] %v3186_v0  ;;  %374 = vst [vmem:[#allocation2 + $0x12] sm:$0x1] %v3186_v0  ;;  %2339 = vmatprep.subr.bf16.mxu0 %v2946_v1  ;;  %v2948_v3 = vld [vmem:[#allocation6 + $0xb8] sm:$0xff]   ;;  %v2951_v6 = vld [vmem:[#allocation6 + $0xb0] sm:$0xff]  }
  0x6a   : > { %375 = vst [vmem:[#allocation2 + $0x23] sm:$0x1] %v3186_v0  ;;  %2340 = vmatpush3.bf16.msra.mxu0 %v2947_v2  ;;  %2546 = vmatpush3.bf16.msra.mxu1 %v2948_v3  ;;  %v2953_v8 = vld [vmem:[#allocation6 + $0x28] sm:$0xff]   ;;  %v2955_v10 = vld [vmem:[#allocation6 + $0x60] sm:$0xff]   ;;  %v2958_v13 = vld [vmem:[#allocation6 + $0x58] sm:$0xff]   ;;  %vm742_vm2 = vcmask 277504  }
  0x6b   : > { %2341 = vmatprep.subr.bf16.mxu0 %v2949_v4  ;;  %2547 = vmatprep.subr.bf16.mxu1 %v3186_v0  ;;  %v2954_v9 = vld [vmem:[#allocation6 + $0xa8] sm:$0xff]   ;;  %v2956_v11 = vld [vmem:[#allocation6 + $0x20] sm:$0xff]   ;;  %v2959_v14 = vld [vmem:[#allocation6 + $0x18] sm:$0xff]   ;;  %vm890_vm3 = vcmask 15360   ;;  %s3838_s23 = scalar_lea.vmem [#allocation11], %s2236_s3  ;;  %vm2095_vm4 = vcmask 1045504  }
  0x6c   : > { %v2957_v12 = vld [vmem:[#allocation6 + $0xa0] sm:$0xff]   ;;  %v2960_v15 = vld [vmem:[#allocation6 + $0x98] sm:$0xff]   ;;  %v2961_v16 = vld [vmem:[#allocation6 + $0x50] sm:$0xff]   ;;  %s2123_s3 = sshll.u32 %s3838_s23, 4  ;;  %s2338_s15 = sshll.u32 %s3257_s9, 9  ;;  %s3848_s3 = int_to_ptr.vmem [resolvable:$true] %s2123_s3 }
  0x6d   : > { %v2962_v17 = vld [vmem:[#allocation6 + $0x10] sm:$0xff]   ;;  %v2964_v19 = vld [vmem:[#allocation6 + $0x48] sm:$0xff]   ;;  %v2967_v22 = vld [vmem:[#allocation6 + $0x40] sm:$0xff]   ;;  %s3855_s10 = scalar_lea.hbm %s3907_s8, %s2338_s15  ;;  %s2109_s18 = scalar_lea.sflag [#allocation5], %s3377_s1 }
  0x6e   : > { %2342 = vmatpush3.bf16.msra.mxu0 %v2950_v5  ;;  %2548 = vmatpush3.bf16.msra.mxu1 %v2951_v6  ;;  %v2963_v18 = vld [vmem:[#allocation6 + $0x90] sm:$0xff]   ;;  %v2965_v20 = vld [vmem:[#allocation6 + $0x8] sm:$0xff]   ;;  %v376_v23 = vld [vmem:[%s3383_s24] sm:$0xff]  ;;  %s3104_s14 = scalar_lea.vmem %s3848_s3, 512  ;;  %p3933_p6 = scmp.ne.s32.totalorder %s3923_s16, 0 }
  0x6f   : > { %2343 = vmatprep.subr.bf16.mxu0 %v2952_v7  ;;  %2549 = vmatprep.subr.bf16.mxu1 %v3186_v0  ;;  %v2966_v21 = vld [vmem:[#allocation6 + $0x88] sm:$0xff]   ;;  %v2241_v25 = vld [vmem:[%s3383_s24 + $0x10] sm:$0xff]  ;;  %v2968_v26 = vld [vmem:[#allocation6] sm:$0xff]   ;;  %378 = vst [vmem:[#allocation2 + $0x1] sm:$0xff] %v376_v23  ;;  %p3105_p4 = scmp.ne.s32.totalorder %s3848_s3, %s3104_s14  ;;  %s3188_s9 = smov [#allocation11]  }
  0x70   : > { %v377_v24 = vld [vmem:[%s3383_s24 + $0x8] sm:$0xff]  ;;  %v2242_v28 = vld [vmem:[%s3383_s24 + $0x18] sm:$0xff]  ;;  %383 = vst [vmem:[#allocation2 + $0x13] sm:$0xff] %v2241_v25  ;;  %v2969_v29 = vld [vmem:[#allocation6 + $0x80] sm:$0xff]  }
  0x71   : > { %379 = vst [vmem:[#allocation2 + $0x9] sm:$0xff] %v377_v24  ;;  %v423_v27 = vpack.c.bf16 %v377_v24, %v376_v23  ;;  %384 = vst [vmem:[#allocation2 + $0x1b] sm:$0xff] %v2242_v28  ;;  %v3425_v51 = vld [vmem:[#allocation9 + $0x78] sm:$0xff]  ;;  %v3427_v52 = vld [vmem:[#allocation9 + $0x70] sm:$0xff]  ;;  %p3106_p12 = pnand %p3105_p4, %p3933_p6 }
  0x72   : > { %2344 = vmatpush3.bf16.msra.mxu0 %v2953_v8  ;;  %2550 = vmatpush3.bf16.msra.mxu1 %v2954_v9  ;;  %v3431_v53 = vld [vmem:[#allocation9 + $0x68] sm:$0xff]  ;;  %v3435_v54 = vld [vmem:[#allocation9 + $0x60] sm:$0xff]  ;;  %v3439_v55 = vld [vmem:[#allocation9 + $0x58] sm:$0xff] }
  0x73   : > { %2345 = vmatprep.subr.bf16.mxu0 %v2955_v10  ;;  %2551 = vmatprep.subr.bf16.mxu1 %v3186_v0  ;;  %v3443_v56 = vld [vmem:[#allocation9 + $0x50] sm:$0xff]  ;;  %v3447_v57 = vld [vmem:[#allocation9 + $0x48] sm:$0xff]  ;;  %v3451_v58 = vld [vmem:[#allocation9 + $0x40] sm:$0xff]  ;;  %p3107_p0 = pneg %p3106_p12 }
  0x74   : > { %662 = vmatprep.mubr.bf16.mxu0 %v423_v27  ;;  %v3455_v59 = vld [vmem:[#allocation9 + $0x38] sm:$0xff]  ;;  %v3459_v60 = vld [vmem:[#allocation9 + $0x30] sm:$0xff]  ;;  %v3463_v61 = vld [vmem:[#allocation9 + $0x28] sm:$0xff] }
  0x75   : > { %v3467_v62 = vld [vmem:[#allocation9 + $0x20] sm:$0xff]  ;;  %v3471_v63 = vld [vmem:[#allocation9 + $0x18] sm:$0xff]  ;;  %v3475_v1 = vld [vmem:[#allocation9 + $0x10] sm:$0xff] }
  0x76   : > { %2346 = vmatpush3.bf16.msra.mxu0 %v2956_v11  ;;  %2552 = vmatpush3.bf16.msra.mxu1 %v2957_v12  ;;  %v407_v30 = vld [vmem:[#allocation2] sm:$0xff]  ;;  %v3479_v2 = vld [vmem:[#allocation9 + $0x8] sm:$0xff] }
  0x77   : > { %2347 = vmatprep.subr.bf16.mxu0 %v2958_v13  ;;  %2553 = vmatprep.subr.bf16.mxu1 %v3186_v0  ;;  %v414_v35 = vld [vmem:[#allocation2 + $0x11] sm:$0xff] }
  0x78   : > { %v408_v31 = vld [vmem:[#allocation2 + $0x8] sm:$0xff]  ;;  %v415_v36 = vld [vmem:[#allocation2 + $0x19] sm:$0xff]  ;;  %v409_v39 = vld [vmem:[#allocation2 + $0x10] sm:$0xff] }
  0x79   : > { %v417_v32 = vld [vmem:[#allocation2 + $0x2] sm:$0xff]  ;;  %v422_v33 = vpack.c.bf16 %v408_v31, %v407_v30  ;;  %v418_v34 = vld [vmem:[#allocation2 + $0xa] sm:$0xff]  ;;  %v426_v38 = vpack.c.bf16 %v415_v36, %v414_v35  ;;  %v410_v40 = vld [vmem:[#allocation2 + $0x18] sm:$0xff] }
  0x7a   : > { %2348 = vmatpush3.bf16.msra.mxu0 %v2959_v14  ;;  %2554 = vmatpush3.bf16.msra.mxu1 %v2960_v15  ;;  %v424_v37 = vpack.c.bf16 %v418_v34, %v417_v32  ;;  %v419_v41 = vld [vmem:[#allocation2 + $0x12] sm:$0xff]  ;;  %v420_v42 = vld [vmem:[#allocation2 + $0x1a] sm:$0xff]  ;;  %v425_v44 = vpack.c.bf16 %v410_v40, %v409_v39  ;;  %v421_v48 = vld [vmem:[#allocation2 + $0x22] sm:$0x3] }
  0x7b   : > { %2349 = vmatprep.subr.bf16.mxu0 %v2961_v16  ;;  %2555 = vmatprep.subr.bf16.mxu1 %v3186_v0  ;;  %v416_v43 = vld [vmem:[#allocation2 + $0x21] sm:$0x3]  ;;  %v427_v45 = vpack.c.bf16 %v420_v42, %v419_v41  ;;  %v430_v50 = vpack.c.bf16 %v421_v48, %v421_v48 }
  0x7c   : > { %v429_v46 = vpack.c.bf16 %v416_v43, %v416_v43  ;;  %v411_v47 = vld [vmem:[#allocation2 + $0x20] sm:$0x3] }
  0x7d   : > { %v428_v49 = vpack.c.bf16 %v411_v47, %v411_v47  ;;  %v3509_v43 = vld [vmem:[%s3905_s6] sm:$0x3] }
  0x7e   : > { %2350 = vmatpush3.bf16.msra.mxu0 %v2962_v17  ;;  %2556 = vmatpush3.bf16.msra.mxu1 %v2963_v18  ;;  %v3527_v47 = vld [vmem:[%s3906_s7] sm:$0xff] }
  0x7f   : > { %2351 = vmatprep.subr.bf16.mxu0 %v2964_v19  ;;  %2557 = vmatprep.subr.bf16.mxu1 %v3186_v0 }
  0x82   : > { %2352 = vmatpush3.bf16.msra.mxu0 %v2965_v20  ;;  %2558 = vmatpush3.bf16.msra.mxu1 %v2966_v21 }
  0x83   : > { %2353 = vmatprep.subr.bf16.mxu0 %v2967_v22  ;;  %2559 = vmatprep.subr.bf16.mxu1 %v3186_v0 }
  0x86   : > { %2354 = vmatpush3.bf16.msra.mxu0 %v2968_v26  ;;  %2560 = vmatpush3.bf16.msra.mxu1 %v2969_v29  ;;  %v2243_v26 = vld [vmem:[%s3901_s2] ss:$0 sm:$0xff] }
  0x87   : > { %2573 = vmatprep.subr.mxu0 %v3186_v0  ;;  %2586 = vmatprep.subr.mxu1 %v3186_v0 }
  0x89   : > { %663 = vmatmul.mubr.bf16.vlgmr.msra.gmra.mxu0 %v422_v33  ;;  %2562 = vmatmul.mubr.bf16.vlgmr.msra.gmra.mxu1 %v424_v37 }
  0x8a   : > { %670 = vmatprep.mubr.bf16.mxu0 %v426_v38  ;;  %2565 = vmatprep.mubr.msk.bf16.mxu1 %vm3187_vm0, %v3186_v0 }
  0x8b   : > { %2587 = vmatpush3.msra.mxu1 %v3425_v51 }
  0x8c   : > { %2588 = vmatprep.subr.mxu1 %v3186_v0 }
  0x8d   : > { %2589 = vmatpush3.msra.mxu1 %v3427_v52 }
  0x8e   : > { %2590 = vmatprep.subr.mxu1 %v3186_v0 }
  0x8f   : > { %2591 = vmatpush3.msra.mxu1 %v3431_v53 }
  0x90   : > { %2592 = vmatprep.subr.mxu1 %v3186_v0 }
  0x91   : > { %671 = vmatmul.mubr.bf16.gmra.mxu0 %v425_v44  ;;  %2566 = vmatmul.mubr.bf16.gmra.mxu1 %v427_v45  ;;  %v3518_v44 = vld [vmem:[#allocation9] sm:$0xff] }
  0x92   : > { %678 = vmatprep.mubr.bf16.mxu0 %v429_v46  ;;  %2569 = vmatprep.mubr.msk.bf16.mxu1 %vm3187_vm0, %v3186_v0 }
  0x93   : > { %2593 = vmatpush3.msra.mxu1 %v3435_v54 }
  0x94   : > { %2594 = vmatprep.subr.mxu1 %v3186_v0 }
  0x95   : > { %2595 = vmatpush3.msra.mxu1 %v3439_v55 }
  0x96   : > { %2596 = vmatprep.subr.mxu1 %v3186_v0 }
  0x97   : > { %2597 = vmatpush3.msra.mxu1 %v3443_v56 }
  0x98   : > { %2598 = vmatprep.subr.mxu1 %v3186_v0 }
  0x99   : > { %679 = vmatmul.mubr.bf16.gmra.mxu0 %v428_v49  ;;  %2570 = vmatmul.mubr.bf16.gmra.mxu1 %v430_v50  ;;  %v3538_v50 = vld [vmem:[%s3906_s7 + $0x8] sm:$0xff] }
  0x9a   : > { %2583 = vmatprep.mubr.msk.f32.mxu0 %vm3187_vm0, %v3186_v0  ;;  %2618 = vmatprep.mubr.msk.f32.mxu1 %vm3187_vm0, %v3186_v0 }
  0x9b   : > { %2599 = vmatpush3.msra.mxu1 %v3447_v57 }
  0x9c   : > { %2600 = vmatprep.subr.mxu1 %v3186_v0 }
  0x9d   : > { %2601 = vmatpush3.msra.mxu1 %v3451_v58 }
  0x9e   : > { %2602 = vmatprep.subr.mxu1 %v3186_v0 }
  0x9f   : > { %2603 = vmatpush3.msra.mxu1 %v3455_v59 }
  0xa0   : > { %2604 = vmatprep.subr.mxu1 %v3186_v0 }
  0xa1   : > { %2605 = vmatpush3.msra.mxu1 %v3459_v60 }
  0xa2   : > { %2606 = vmatprep.subr.mxu1 %v3186_v0 }
  0xa3   : > { %2607 = vmatpush3.msra.mxu1 %v3463_v61 }
  0xa4   : > { %2608 = vmatprep.subr.mxu1 %v3186_v0 }
  0xa5   : > { %2609 = vmatpush3.msra.mxu1 %v3467_v62 }
  0xa6   : > { %2610 = vmatprep.subr.mxu1 %v3186_v0 }
  0xa7   : > { %2611 = vmatpush3.msra.mxu1 %v3471_v63 }
  0xa8   : > { %2612 = vmatprep.subr.mxu1 %v3186_v0 }
  0xa9   : > { %2613 = vmatpush3.msra.mxu1 %v3475_v1 }
  0xaa   : > { %2614 = vmatprep.subr.mxu1 %v3186_v0 }
  0xab   : > { %2615 = vmatpush3.msra.mxu1 %v3479_v2 }
  0xac   : > { %2616 = vmatprep.subr.mxu1 %v3186_v0 }
  0xad   : > { %2617 = vmatpush3.msra.mxu1 %v3518_v44 }
  0xae   : > { %2638 = vmatprep.subr.mxu1 %v3186_v0 }
 0x149   : > { %v2355_v3 = vpop.f32.mrf.mxu0  ;;  %v720_v4 = vpop.f32.mrf.mxu1 }
 0x14b   : > { %v2356_v5 = vpop.f32.mrf.mxu0  ;;  %v2563_v6 = vpop.f32.mrf.mxu1 }
 0x14c   : > { %v2357_v33 = vadd.f32 %v2356_v5, %v2355_v3  ;;  %v3551_v3 = vld [vmem:[%s3906_s7 + $0x10] sm:$0xff]  ;;  %v3577_v5 = vld [vmem:[%s3906_s7 + $0x20] sm:$0x3] }
 0x14d   : > { %v2358_v7 = vpop.f32.mrf.mxu0  ;;  %v723_v8 = vpop.f32.mrf.mxu1 }
 0x14e   : > { %v665_v39 = vadd.f32 %v2357_v33, %v2243_v26  ;;  %v2970_v33 = vld [vmem:[#allocation8 + $0x78] sm:$0xff]  }
 0x14f   : > { %v2359_v9 = vpop.f32.mrf.mxu0  ;;  %v2564_v10 = vpop.f32.mrf.mxu1 }
 0x150   : > { %v2360_v28 = vadd.f32 %v2359_v9, %v2358_v7  ;;  %v3503_v42 = vadd.f32 %v720_v4, %v665_v39  ;;  %v3564_v4 = vld [vmem:[%s3906_s7 + $0x18] sm:$0xff]  ;;  %v2977_v39 = vld [vmem:[#allocation8 + $0x28] sm:$0xff]  }
 0x151   : > { %v2361_v11 = vpop.f32.mrf.mxu0  ;;  %v728_v12 = vpop.f32.mrf.mxu1 }
 0x152   : > { %v668_v37 = vadd.f32 %v2360_v28, %v2243_v26  ;;  %v2973_v28 = vld [vmem:[#allocation8 + $0xb8] sm:$0xff]  }
 0x153   : > { %v2362_v13 = vpop.f32.mrf.mxu0  ;;  %v2567_v14 = vpop.f32.mrf.mxu1 }
 0x154   : > { %v2363_v23 = vadd.f32 %v2362_v13, %v2361_v11  ;;  %v3499_v41 = vadd.f32 %v723_v8, %v668_v37  ;;  %v2974_v37 = vld [vmem:[#allocation8 + $0x30] sm:$0xff]  }
 0x155   : > { %v2364_v15 = vpop.f32.mrf.mxu0  ;;  %v731_v16 = vpop.f32.mrf.mxu1 }
 0x156   : > { %v673_v34 = vadd.f32 %v2363_v23, %v2243_v26 }
 0x157   : > { %v2365_v17 = vpop.f32.mrf.mxu0  ;;  %v2568_v18 = vpop.f32.mrf.mxu1 }
 0x158   : > { %v2366_v20 = vadd.f32 %v2365_v17, %v2364_v15  ;;  %v3495_v40 = vadd.f32 %v728_v12, %v673_v34  ;;  %v2971_v34 = vld [vmem:[#allocation8 + $0x38] sm:$0xff]  }
 0x159   : > { %v2367_v19 = vpop.f32.mrf.mxu0  ;;  %v736_v21 = vpop.f32.mrf.mxu1 }
 0x15a   : > { %v676_v29 = vadd.f32 %v2366_v20, %v2243_v26 }
 0x15b   : > { %v2368_v22 = vpop.f32.mrf.mxu0  ;;  %v2571_v25 = vpop.f32.mrf.mxu1 }
 0x15c   : > { %v2369_v24 = vadd.f32 %v2368_v22, %v2367_v19  ;;  %v3490_v38 = vadd.f32 %v731_v16, %v676_v29  ;;  %v2976_v29 = vld [vmem:[#allocation8 + $0xb0] sm:$0xff]  }
 0x15d   : > { %v2370_v27 = vpop.f32.mrf.mxu0  ;;  %v739_v31 = vpop.f32.mrf.mxu1 }
 0x15e   : > { %v681_v30 = vadd.f32 %v2369_v24, %v2243_v26 }
 0x15f   : > { %v2371_v32 = vpop.f32.mrf.mxu0  ;;  %v2572_v36 = vpop.f32.mrf.mxu1 }
 0x160   : > { %v3488_v35 = vadd.f32 %v736_v21, %v681_v30  ;;  %v2972_v36 = vld [vmem:[#allocation8 + $0x70] sm:$0xff]  }
 0x162   : > { %2574 = vmatpush3.msk.msra.mxu0 %vm746_vm1, %v3488_v35 }
 0x163   : > { %2575 = vmatprep.subr.mxu0 %v3186_v0 }
 0x164   : > { %2576 = vmatpush3.msra.mxu0 %v3490_v38 }
 0x165   : > { %2577 = vmatprep.subr.mxu0 %v3186_v0 }
 0x166   : > { %2578 = vmatpush3.msra.mxu0 %v3495_v40 }
 0x167   : > { %2579 = vmatprep.subr.mxu0 %v3186_v0 }
 0x168   : > { %2580 = vmatpush3.msra.mxu0 %v3499_v41 }
 0x169   : > { %2581 = vmatprep.subr.mxu0 %v3186_v0 }
 0x16a   : > { %2582 = vmatpush3.msra.mxu0 %v3503_v42 }
 0x16b   : > { %2584 = vmatmul.mubr.msk.f32.vlgmr.msra.gmra.mxu0 %vm742_vm2, %v3509_v43  ;;  %2621 = vmatprep.subr.mxu0 %v3186_v0 }
 0x16c   : > { %2623 = vmatprep.mubr.msk.f32.mxu0 %vm3187_vm0, %v3186_v0 }
 0x22b   : > { %v816_v45 = vpop.f32.mrf.mxu0 }
 0x22c   : > { %2619 = vmatmul.mubr.f32.vlgmr.msra.gmra.mxu1 %v816_v45  ;;  %v2981_v45 = vld [vmem:[#allocation8 + $0x58] sm:$0xff]  }
 0x22d   : > { %v2585_v46 = vpop.f32.mrf.mxu0  ;;  %2648 = vmatprep.mubr.msk.f32.mxu1 %vm3187_vm0, %v3186_v0 }
 0x22e   : > { %v2982_v46 = vld [vmem:[#allocation8 + $0xa0] sm:$0xff]  }
 0x2ec   : > { %v886_v48 = vpop.f32.mrf.mxu1 }
 0x2ed   : > { %2622 = vmatpush3.msk.msra.mxu0 %vm746_vm1, %v886_v48  ;;  %v2983_v48 = vld [vmem:[#allocation8 + $0x18] sm:$0xff]  }
 0x2ee   : > { %v2620_v49 = vpop.f32.mrf.mxu1  ;;  %2624 = vmatmul.mubr.msk.f32.vlgmr.msra.gmra.mxu0 %vm890_vm3, %v3527_v47  ;;  %2651 = vmatprep.subr.mxu0 %v3186_v0 }
 0x2ef   : > { %2626 = vmatprep.mubr.msk.f32.mxu0 %vm3187_vm0, %v3186_v0  ;;  %2652 = vmatpush3.msra.mxu0 %v3425_v51  ;;  %v2984_v49 = vld [vmem:[#allocation8 + $0x50] sm:$0xff]  }
 0x2f0   : > { %2653 = vmatprep.subr.mxu0 %v3186_v0 }
 0x2f1   : > { %2654 = vmatpush3.msra.mxu0 %v3427_v52 }
 0x2f2   : > { %2627 = vmatmul.mubr.msk.f32.gmra.mxu0 %vm890_vm3, %v3538_v50  ;;  %2655 = vmatprep.subr.mxu0 %v3186_v0 }
 0x2f3   : > { %2629 = vmatprep.mubr.msk.f32.mxu0 %vm3187_vm0, %v3186_v0  ;;  %2656 = vmatpush3.msra.mxu0 %v3431_v53 }
 0x2f4   : > { %2657 = vmatprep.subr.mxu0 %v3186_v0 }
 0x2f5   : > { %2658 = vmatpush3.msra.mxu0 %v3435_v54 }
 0x2f6   : > { %2630 = vmatmul.mubr.msk.f32.gmra.mxu0 %vm890_vm3, %v3551_v3  ;;  %2659 = vmatprep.subr.mxu0 %v3186_v0 }
 0x2f7   : > { %2632 = vmatprep.mubr.msk.f32.mxu0 %vm3187_vm0, %v3186_v0  ;;  %2660 = vmatpush3.msra.mxu0 %v3439_v55 }
 0x2f8   : > { %2661 = vmatprep.subr.mxu0 %v3186_v0 }
 0x2f9   : > { %2662 = vmatpush3.msra.mxu0 %v3443_v56 }
 0x2fa   : > { %2633 = vmatmul.mubr.msk.f32.gmra.mxu0 %vm890_vm3, %v3564_v4  ;;  %2663 = vmatprep.subr.mxu0 %v3186_v0 }
 0x2fb   : > { %2635 = vmatprep.mubr.msk.f32.mxu0 %vm3187_vm0, %v3186_v0  ;;  %2664 = vmatpush3.msra.mxu0 %v3447_v57 }
 0x2fc   : > { %2665 = vmatprep.subr.mxu0 %v3186_v0 }
 0x2fd   : > { %2666 = vmatpush3.msra.mxu0 %v3451_v58 }
 0x2fe   : > { %2636 = vmatmul.mubr.msk.f32.gmra.mxu0 %vm890_vm3, %v3577_v5  ;;  %2667 = vmatprep.subr.mxu0 %v3186_v0 }
 0x2ff   : > { %2668 = vmatpush3.msra.mxu0 %v3455_v59  ;;  %2683 = vmatprep.mubr.msk.f32.mxu0 %vm3187_vm0, %v3186_v0 }
 0x300   : > { %2669 = vmatprep.subr.mxu0 %v3186_v0 }
 0x301   : > { %2670 = vmatpush3.msra.mxu0 %v3459_v60 }
 0x302   : > { %2671 = vmatprep.subr.mxu0 %v3186_v0 }
 0x303   : > { %2672 = vmatpush3.msra.mxu0 %v3463_v61 }
 0x304   : > { %2673 = vmatprep.subr.mxu0 %v3186_v0 }
 0x305   : > { %2674 = vmatpush3.msra.mxu0 %v3467_v62 }
 0x306   : > { %2675 = vmatprep.subr.mxu0 %v3186_v0 }
 0x307   : > { %2676 = vmatpush3.msra.mxu0 %v3471_v63 }
 0x308   : > { %2677 = vmatprep.subr.mxu0 %v3186_v0 }
 0x309   : > { %2678 = vmatpush3.msra.mxu0 %v3475_v1 }
 0x30a   : > { %2679 = vmatprep.subr.mxu0 %v3186_v0 }
 0x30b   : > { %2680 = vmatpush3.msra.mxu0 %v3479_v2 }
 0x30c   : > { %2681 = vmatprep.subr.mxu0 %v3186_v0 }
 0x30d   : > { %2682 = vmatpush3.msra.mxu0 %v3518_v44 }
 0x30e   : > { %2703 = vmatprep.subr.bf16.mxu0 %v3186_v0 }
 0x3ae   : > { %v975_v6 = vpop.f32.mrf.mxu0 }
 0x3af   : > { %v3622_v22 = vsub.f32 %v3503_v42, %v975_v6  ;;  %v2980_v42 = vld [vmem:[#allocation8 + $0x20] sm:$0xff]   ;;  %v2985_v6 = vld [vmem:[#allocation8 + $0x98] sm:$0xff]  }
 0x3b0   : > { %v2625_v7 = vpop.f32.mrf.mxu0 }
 0x3b1   : > { %v1004_v25 = vmul.f32 %v3622_v22, %v3622_v22  ;;  %v2986_v7 = vld [vmem:[#allocation8 + $0x10] sm:$0xff]  }
 0x3b2   : > { %v980_v8 = vpop.f32.mrf.mxu0 }
 0x3b3   : > { %v3615_v20 = vsub.f32 %v3499_v41, %v980_v8  ;;  %v2979_v41 = vld [vmem:[#allocation8 + $0xa8] sm:$0xff]  }
 0x3b4   : > { %v2628_v9 = vpop.f32.mrf.mxu0  ;;  %v2987_v8 = vld [vmem:[#allocation8 + $0x48] sm:$0xff]  }
 0x3b5   : > { %v1005_v24 = vmul.f32 %v3615_v20, %v3615_v20  ;;  %v2988_v9 = vld [vmem:[#allocation8 + $0x90] sm:$0xff]  }
 0x3b6   : > { %v985_v10 = vpop.f32.mrf.mxu0 }
 0x3b7   : > { %v3610_v18 = vsub.f32 %v3495_v40, %v985_v10  ;;  %v2978_v40 = vld [vmem:[#allocation8 + $0x60] sm:$0xff]   ;;  %v2989_v10 = vld [vmem:[#allocation8 + $0x8] sm:$0xff]  }
 0x3b8   : > { %v2631_v11 = vpop.f32.mrf.mxu0 }
 0x3b9   : > { %v1006_v23 = vmul.f32 %v3610_v18, %v3610_v18  ;;  %v2990_v11 = vld [vmem:[#allocation8 + $0x40] sm:$0xff]  }
 0x3ba   : > { %v990_v12 = vpop.f32.mrf.mxu0 }
 0x3bb   : > { %v3604_v15 = vsub.f32 %v3490_v38, %v990_v12  ;;  %v2975_v38 = vld [vmem:[#allocation8 + $0x68] sm:$0xff]  }
 0x3bc   : > { %v2634_v13 = vpop.f32.mrf.mxu0  ;;  %v2991_v12 = vld [vmem:[#allocation8 + $0x88] sm:$0xff]  }
 0x3bd   : > { %v1007_v21 = vmul.f32 %v3604_v15, %v3604_v15  ;;  %v2992_v13 = vld [vmem:[#allocation8] sm:$0xff]  }
 0x3be   : > { %v995_v14 = vpop.f32.mrf.mxu0 }
 0x3bf   : > { %v3607_v16 = vsub.f32 %v3488_v35, %v995_v14  ;;  %v2993_v14 = vld [vmem:[#allocation8 + $0x80] sm:$0xff]  }
 0x3c0   : > { %v2637_v17 = vpop.f32.mrf.mxu0 }
 0x3c1   : > { %v1008_v19 = vmul.f32 %v3607_v16, %v3607_v16 }
 0x3c3   : > { %2639 = vmatpush3.msk.msra.mxu1 %vm746_vm1, %v1008_v19 }
 0x3c4   : > { %2640 = vmatprep.subr.mxu1 %v3186_v0 }
 0x3c5   : > { %2641 = vmatpush3.msra.mxu1 %v1007_v21 }
 0x3c6   : > { %2642 = vmatprep.subr.mxu1 %v3186_v0 }
 0x3c7   : > { %2643 = vmatpush3.msra.mxu1 %v1006_v23 }
 0x3c8   : > { %2644 = vmatprep.subr.mxu1 %v3186_v0 }
 0x3c9   : > { %2645 = vmatpush3.msra.mxu1 %v1005_v24 }
 0x3ca   : > { %2646 = vmatprep.subr.mxu1 %v3186_v0 }
 0x3cb   : > { %2647 = vmatpush3.msra.mxu1 %v1004_v25 }
 0x3cc   : > { %2649 = vmatmul.mubr.msk.f32.vlgmr.msra.gmra.mxu1 %vm742_vm2, %v3509_v43  ;;  %2686 = vmatprep.subr.mxu1 %v3186_v0 }
 0x3cd   : > { %2688 = vmatprep.mubr.msk.f32.mxu1 %vm3187_vm0, %v3186_v0 }
 0x48c   : > { %v1078_v26 = vpop.f32.mrf.mxu1 }
 0x48d   : > { %2684 = vmatmul.mubr.f32.vlgmr.msra.gmra.mxu0 %v1078_v26 }
 0x48e   : > { %v2650_v27 = vpop.f32.mrf.mxu1  ;;  %2719 = vmatprep.mubr.msk.bf16.mxu0 %vm3187_vm0, %v3186_v0  ;;  %2704 = vmatpush3.bf16.msra.mxu0 %v2973_v28 }
 0x48f   : > { %2705 = vmatprep.subr.bf16.mxu0 %v3186_v0 }
 0x492   : > { %2706 = vmatpush3.bf16.msra.mxu0 %v2976_v29 }
 0x493   : > { %2707 = vmatprep.subr.bf16.mxu0 %v3186_v0 }
 0x496   : > { %2708 = vmatpush3.bf16.msra.mxu0 %v2979_v41 }
 0x497   : > { %2709 = vmatprep.subr.bf16.mxu0 %v3186_v0 }
 0x49a   : > { %2710 = vmatpush3.bf16.msra.mxu0 %v2982_v46 }
 0x49b   : > { %2711 = vmatprep.subr.bf16.mxu0 %v3186_v0 }
 0x49e   : > { %2712 = vmatpush3.bf16.msra.mxu0 %v2985_v6 }
 0x49f   : > { %2713 = vmatprep.subr.bf16.mxu0 %v3186_v0 }
 0x4a2   : > { %2714 = vmatpush3.bf16.msra.mxu0 %v2988_v9 }
 0x4a3   : > { %2715 = vmatprep.subr.bf16.mxu0 %v3186_v0 }
 0x4a6   : > { %2716 = vmatpush3.bf16.msra.mxu0 %v2991_v12 }
 0x4a7   : > { %2717 = vmatprep.subr.bf16.mxu0 %v3186_v0 }
 0x4aa   : > { %2718 = vmatpush3.bf16.msra.mxu0 %v2993_v14 }
 0x4ab   : > { %2744 = vmatprep.subr.mxu0 %v3186_v0 }
 0x54d   : > { %v1148_v30 = vpop.f32.mrf.mxu0 }
 0x54e   : > { %v1149_v31 = vadd.f32 1e-05, %v1148_v30 }
 0x54f   : > { %v2685_v32 = vpop.f32.mrf.mxu0 }
 0x550   : > { %2994 = vrsqrt.f32 %v1149_v31 }
 0x55d   : > { %v2995_v35 = vpop.eup %2994 }
 0x55e   : > { %2687 = vmatpush3.msk.msra.mxu1 %vm746_vm1, %v2995_v35 }
 0x55f   : > { %2689 = vmatmul.mubr.msk.f32.vlgmr.msra.gmra.mxu1 %vm890_vm3, %v3527_v47  ;;  %2442 = vmatprep.subr.bf16.mxu1 %v2970_v33 }
 0x560   : > { %2691 = vmatprep.mubr.msk.f32.mxu1 %vm3187_vm0, %v3186_v0  ;;  %2443 = vmatpush3.bf16.msra.mxu1 %v2971_v34 }
 0x561   : > { %2444 = vmatprep.subr.bf16.mxu1 %v2972_v36 }
 0x563   : > { %2692 = vmatmul.mubr.msk.f32.gmra.mxu1 %vm890_vm3, %v3538_v50 }
 0x564   : > { %2694 = vmatprep.mubr.msk.f32.mxu1 %vm3187_vm0, %v3186_v0  ;;  %2445 = vmatpush3.bf16.msra.mxu1 %v2974_v37 }
 0x565   : > { %2446 = vmatprep.subr.bf16.mxu1 %v2975_v38 }
 0x567   : > { %2695 = vmatmul.mubr.msk.f32.gmra.mxu1 %vm890_vm3, %v3551_v3 }
 0x568   : > { %2697 = vmatprep.mubr.msk.f32.mxu1 %vm3187_vm0, %v3186_v0  ;;  %2447 = vmatpush3.bf16.msra.mxu1 %v2977_v39 }
 0x569   : > { %2448 = vmatprep.subr.bf16.mxu1 %v2978_v40 }
 0x56b   : > { %2698 = vmatmul.mubr.msk.f32.gmra.mxu1 %vm890_vm3, %v3564_v4 }
 0x56c   : > { %2700 = vmatprep.mubr.msk.f32.mxu1 %vm3187_vm0, %v3186_v0  ;;  %2449 = vmatpush3.bf16.msra.mxu1 %v2980_v42 }
 0x56d   : > { %2450 = vmatprep.subr.bf16.mxu1 %v2981_v45 }
 0x56f   : > { %2701 = vmatmul.mubr.msk.f32.gmra.mxu1 %vm890_vm3, %v3577_v5 }
 0x570   : > { %2451 = vmatpush3.bf16.msra.mxu1 %v2983_v48 }
 0x571   : > { %2452 = vmatprep.subr.bf16.mxu1 %v2984_v49 }
 0x574   : > { %2453 = vmatpush3.bf16.msra.mxu1 %v2986_v7 }
 0x575   : > { %2454 = vmatprep.subr.bf16.mxu1 %v2987_v8 }
 0x578   : > { %2455 = vmatpush3.bf16.msra.mxu1 %v2989_v10 }
 0x579   : > { %2456 = vmatprep.subr.bf16.mxu1 %v2990_v11 }
 0x57c   : > { %2457 = vmatpush3.bf16.msra.mxu1 %v2992_v13 }
 0x57d   : > { %2731 = vmatprep.subr.mxu1 %v3186_v0 }
 0x61f   : > { %v1222_v17 = vpop.f32.mrf.mxu1 }
 0x620   : > { %v1246_v19 = vmul.f32 %v1222_v17, %v3622_v22 }
 0x621   : > { %v2690_v21 = vpop.f32.mrf.mxu1 }
 0x622   : > { %v1251_v23 = vmax.f32 %v1246_v19, 0.0 }
 0x623   : > { %v1227_v24 = vpop.f32.mrf.mxu1 }
 0x624   : > { %1256 = vst [vmem:[#allocation2 + $0x1] sm:$0xff] %v1251_v23  ;;  %v1247_v25 = vmul.f32 %v1227_v24, %v3615_v20 }
 0x625   : > { %v2693_v26 = vpop.f32.mrf.mxu1 }
 0x626   : > { %v1252_v27 = vmax.f32 %v1247_v25, 0.0 }
 0x627   : > { %v1232_v28 = vpop.f32.mrf.mxu1 }
 0x628   : > { %1257 = vst [vmem:[#allocation2 + $0x9] sm:$0xff] %v1252_v27  ;;  %v1248_v29 = vmul.f32 %v1232_v28, %v3610_v18  ;;  %v1277_v30 = vpack.c.bf16 %v1252_v27, %v1251_v23 }
 0x629   : > { %v2696_v31 = vpop.f32.mrf.mxu1 }
 0x62a   : > { %v1253_v32 = vmax.f32 %v1248_v29, 0.0  ;;  %1516 = vmatprep.mubr.bf16.mxu1 %v1277_v30 }
 0x62b   : > { %v1237_v33 = vpop.f32.mrf.mxu1  ;;  %v1261_v37 = vld [vmem:[#allocation2] sm:$0xff] }
 0x62c   : > { %1258 = vst [vmem:[#allocation2 + $0x11] sm:$0xff] %v1253_v32  ;;  %v1249_v22 = vmul.f32 %v1237_v33, %v3604_v15 }
 0x62d   : > { %v2699_v34 = vpop.f32.mrf.mxu1 }
 0x62e   : > { %v1254_v35 = vmax.f32 %v1249_v22, 0.0 }
 0x62f   : > { %v1242_v36 = vpop.f32.mrf.mxu1  ;;  %v1262_v38 = vld [vmem:[#allocation2 + $0x8] sm:$0xff] }
 0x630   : > { %1259 = vst [vmem:[#allocation2 + $0x19] sm:$0xff] %v1254_v35  ;;  %v1250_v20 = vmul.f32 %v1242_v36, %v3607_v16  ;;  %v1276_v39 = vpack.c.bf16 %v1262_v38, %v1261_v37  ;;  %v1280_v40 = vpack.c.bf16 %v1254_v35, %v1253_v32  ;;  %v1271_v42 = vld [vmem:[#allocation2 + $0x2] sm:$0xff] }
 0x631   : > { %v2702_v41 = vpop.f32.mrf.mxu1 }
 0x632   : > { %v1255_v18 = vmax.f32 %v1250_v20, 0.0  ;;  %1517 = vmatmul.mubr.bf16.vlgmr.msra.gmra.mxu1 %v1276_v39  ;;  %v2284_v20 = vld [vmem:[%s3903_s4] ss:$0 sm:$0xff] }
 0x633   : > { %v1272_v45 = vld [vmem:[#allocation2 + $0xa] sm:$0xff]  ;;  %1524 = vmatprep.mubr.bf16.mxu1 %v1280_v40 }
 0x634   : > { %1260 = vst [vmem:[#allocation2 + $0x21] sm:$0x3] %v1255_v18  ;;  %v1278_v46 = vpack.c.bf16 %v1272_v45, %v1271_v42  ;;  %v1263_v15 = vld [vmem:[#allocation2 + $0x10] sm:$0xff] }
 0x636   : > { %2720 = vmatmul.mubr.bf16.vlgmr.msra.gmra.mxu0 %v1278_v46 }
 0x637   : > { %v1264_v48 = vld [vmem:[#allocation2 + $0x18] sm:$0xff]  ;;  %2723 = vmatprep.mubr.msk.bf16.mxu0 %vm3187_vm0, %v3186_v0  ;;  %2745 = vmatpush3.msra.mxu0 %v3425_v51 }
 0x638   : > { %v1279_v49 = vpack.c.bf16 %v1264_v48, %v1263_v15  ;;  %2746 = vmatprep.subr.mxu0 %v3186_v0  ;;  %v1273_v6 = vld [vmem:[#allocation2 + $0x12] sm:$0xff] }
 0x639   : > { %2747 = vmatpush3.msra.mxu0 %v3427_v52 }
 0x63a   : > { %1525 = vmatmul.mubr.bf16.gmra.mxu1 %v1279_v49  ;;  %2748 = vmatprep.subr.mxu0 %v3186_v0 }
 0x63b   : > { %v1270_v16 = vld [vmem:[#allocation2 + $0x21] sm:$0x3]  ;;  %2749 = vmatpush3.msra.mxu0 %v3431_v53 }
 0x63c   : > { %v1274_v7 = vld [vmem:[#allocation2 + $0x1a] sm:$0xff]  ;;  %v1283_v8 = vpack.c.bf16 %v1270_v16, %v1270_v16  ;;  %2750 = vmatprep.subr.mxu0 %v3186_v0  ;;  %v1275_v12 = vld [vmem:[#allocation2 + $0x22] sm:$0x3] }
 0x63d   : > { %v1281_v9 = vpack.c.bf16 %v1274_v7, %v1273_v6  ;;  %v1265_v10 = vld [vmem:[#allocation2 + $0x20] sm:$0x3]  ;;  %2751 = vmatpush3.msra.mxu0 %v3435_v54  ;;  %v1284_v13 = vpack.c.bf16 %v1275_v12, %v1275_v12 }
 0x63e   : > { %1532 = vmatprep.mubr.bf16.mxu1 %v1283_v8  ;;  %2752 = vmatprep.subr.mxu0 %v3186_v0  ;;  %v1282_v11 = vpack.c.bf16 %v1265_v10, %v1265_v10 }
 0x63f   : > { %2724 = vmatmul.mubr.bf16.gmra.mxu0 %v1281_v9 }
 0x640   : > { %2727 = vmatprep.mubr.msk.bf16.mxu0 %vm3187_vm0, %v3186_v0  ;;  %2753 = vmatpush3.msra.mxu0 %v3439_v55 }
 0x641   : > { %2754 = vmatprep.subr.mxu0 %v3186_v0 }
 0x642   : > { %1533 = vmatmul.mubr.bf16.gmra.mxu1 %v1282_v11  ;;  %2755 = vmatpush3.msra.mxu0 %v3443_v56 }
 0x643   : > { %2741 = vmatprep.mubr.msk.f32.mxu1 %vm3187_vm0, %v3186_v0  ;;  %2756 = vmatprep.subr.mxu0 %v3186_v0 }
 0x644   : > { %2757 = vmatpush3.msra.mxu0 %v3447_v57 }
 0x645   : > { %2758 = vmatprep.subr.mxu0 %v3186_v0 }
 0x646   : > { %2759 = vmatpush3.msra.mxu0 %v3451_v58 }
 0x647   : > { %2728 = vmatmul.mubr.bf16.gmra.mxu0 %v1284_v13  ;;  %2760 = vmatprep.subr.mxu0 %v3186_v0 }
 0x648   : > { %2776 = vmatprep.mubr.msk.f32.mxu0 %vm3187_vm0, %v3186_v0  ;;  %2761 = vmatpush3.msra.mxu0 %v3455_v59 }
 0x649   : > { %2762 = vmatprep.subr.mxu0 %v3186_v0 }
 0x64a   : > { %2763 = vmatpush3.msra.mxu0 %v3459_v60 }
 0x64b   : > { %2764 = vmatprep.subr.mxu0 %v3186_v0 }
 0x64c   : > { %2765 = vmatpush3.msra.mxu0 %v3463_v61 }
 0x64d   : > { %2766 = vmatprep.subr.mxu0 %v3186_v0 }
 0x64e   : > { %2767 = vmatpush3.msra.mxu0 %v3467_v62 }
 0x64f   : > { %2768 = vmatprep.subr.mxu0 %v3186_v0 }
 0x650   : > { %2769 = vmatpush3.msra.mxu0 %v3471_v63 }
 0x651   : > { %2770 = vmatprep.subr.mxu0 %v3186_v0 }
 0x652   : > { %2771 = vmatpush3.msra.mxu0 %v3475_v1 }
 0x653   : > { %2772 = vmatprep.subr.mxu0 %v3186_v0 }
 0x654   : > { %2773 = vmatpush3.msra.mxu0 %v3479_v2 }
 0x655   : > { %2774 = vmatprep.subr.mxu0 %v3186_v0 }
 0x656   : > { %2775 = vmatpush3.msra.mxu0 %v3518_v44 }
 0x657   : > { %2809 = vmatprep.subr.mxu0 %v3186_v0 }
 0x6f2   : > { %v2458_v14 = vpop.f32.mrf.mxu1 }
 0x6f4   : > { %v2459_v17 = vpop.f32.mrf.mxu1 }
 0x6f5   : > { %v2460_v15 = vadd.f32 %v2459_v17, %v2458_v14 }
 0x6f6   : > { %v1574_v19 = vpop.f32.mrf.mxu0  ;;  %v2461_v21 = vpop.f32.mrf.mxu1 }
 0x6f7   : > { %v1519_v9 = vadd.f32 %v2460_v15, %v2284_v20 }
 0x6f8   : > { %v2721_v23 = vpop.f32.mrf.mxu0  ;;  %v2462_v24 = vpop.f32.mrf.mxu1 }
 0x6f9   : > { %v2463_v41 = vadd.f32 %v2462_v24, %v2461_v21  ;;  %v3731_v12 = vadd.f32 %v1574_v19, %v1519_v9 }
 0x6fa   : > { %v1577_v25 = vpop.f32.mrf.mxu0  ;;  %v2464_v26 = vpop.f32.mrf.mxu1 }
 0x6fb   : > { %v1522_v6 = vadd.f32 %v2463_v41, %v2284_v20 }
 0x6fc   : > { %v2722_v27 = vpop.f32.mrf.mxu0  ;;  %v2465_v28 = vpop.f32.mrf.mxu1 }
 0x6fd   : > { %v2466_v37 = vadd.f32 %v2465_v28, %v2464_v26  ;;  %v3727_v11 = vadd.f32 %v1577_v25, %v1522_v6 }
 0x6fe   : > { %v2467_v30 = vpop.f32.mrf.mxu1 }
 0x6ff   : > { %v1582_v29 = vpop.f32.mrf.mxu0  ;;  %v1527_v48 = vadd.f32 %v2466_v37, %v2284_v20 }
 0x700   : > { %v2468_v32 = vpop.f32.mrf.mxu1 }
 0x701   : > { %v2725_v31 = vpop.f32.mrf.mxu0  ;;  %v2469_v34 = vadd.f32 %v2468_v32, %v2467_v30  ;;  %v3723_v10 = vadd.f32 %v1582_v29, %v1527_v48  ;;  %v2326_v48 = vld [vmem:[%s3383_s24 + $0x18] sm:$0xff] }
 0x702   : > { %v2470_v22 = vpop.f32.mrf.mxu1 }
 0x703   : > { %v1585_v33 = vpop.f32.mrf.mxu0  ;;  %v1530_v18 = vadd.f32 %v2469_v34, %v2284_v20 }
 0x704   : > { %v2471_v36 = vpop.f32.mrf.mxu1 }
 0x705   : > { %v2726_v35 = vpop.f32.mrf.mxu0  ;;  %v2472_v38 = vadd.f32 %v2471_v36, %v2470_v22  ;;  %v3718_v7 = vadd.f32 %v1585_v33, %v1530_v18 }
 0x706   : > { %v2473_v40 = vpop.f32.mrf.mxu1 }
 0x707   : > { %v1590_v39 = vpop.f32.mrf.mxu0  ;;  %v1535_v42 = vadd.f32 %v2472_v38, %v2284_v20  ;;  %v2325_v40 = vld [vmem:[%s3383_s24 + $0x10] sm:$0xff] }
 0x708   : > { %v2474_v46 = vpop.f32.mrf.mxu1 }
 0x709   : > { %v2729_v45 = vpop.f32.mrf.mxu0  ;;  %v3716_v49 = vadd.f32 %v1590_v39, %v1535_v42 }
 0x70b   : > { %v1593_v16 = vpop.f32.mrf.mxu0  ;;  %2732 = vmatpush3.msk.msra.mxu1 %vm746_vm1, %v3716_v49 }
 0x70c   : > { %2733 = vmatprep.subr.mxu1 %v3186_v0 }
 0x70d   : > { %v2730_v8 = vpop.f32.mrf.mxu0  ;;  %2734 = vmatpush3.msra.mxu1 %v3718_v7 }
 0x70e   : > { %2735 = vmatprep.subr.mxu1 %v3186_v0 }
 0x70f   : > { %2736 = vmatpush3.msra.mxu1 %v3723_v10 }
 0x710   : > { %2737 = vmatprep.subr.mxu1 %v3186_v0 }
 0x711   : > { %2738 = vmatpush3.msra.mxu1 %v3727_v11 }
 0x712   : > { %2739 = vmatprep.subr.mxu1 %v3186_v0 }
 0x713   : > { %2740 = vmatpush3.msra.mxu1 %v3731_v12 }
 0x714   : > { %2742 = vmatmul.mubr.msk.f32.vlgmr.msra.gmra.mxu1 %vm742_vm2, %v3509_v43  ;;  %2779 = vmatprep.subr.mxu1 %v3186_v0 }
 0x715   : > { %2781 = vmatprep.mubr.msk.f32.mxu1 %vm3187_vm0, %v3186_v0 }
 0x7d4   : > { %v1665_v13 = vpop.f32.mrf.mxu1 }
 0x7d5   : > { %2777 = vmatmul.mubr.f32.vlgmr.msra.gmra.mxu0 %v1665_v13 }
 0x7d6   : > { %v2743_v14 = vpop.f32.mrf.mxu1  ;;  %2810 = vmatpush3.msra.mxu0 %v3425_v51  ;;  %2841 = vmatprep.mubr.msk.f32.mxu0 %vm3187_vm0, %v3186_v0 }
 0x7d7   : > { %2811 = vmatprep.subr.mxu0 %v3186_v0 }
 0x7d8   : > { %2812 = vmatpush3.msra.mxu0 %v3427_v52 }
 0x7d9   : > { %2813 = vmatprep.subr.mxu0 %v3186_v0 }
 0x7da   : > { %2814 = vmatpush3.msra.mxu0 %v3431_v53 }
 0x7db   : > { %2815 = vmatprep.subr.mxu0 %v3186_v0 }
 0x7dc   : > { %2816 = vmatpush3.msra.mxu0 %v3435_v54 }
 0x7dd   : > { %2817 = vmatprep.subr.mxu0 %v3186_v0 }
 0x7de   : > { %2818 = vmatpush3.msra.mxu0 %v3439_v55 }
 0x7df   : > { %2819 = vmatprep.subr.mxu0 %v3186_v0 }
 0x7e0   : > { %2820 = vmatpush3.msra.mxu0 %v3443_v56 }
 0x7e1   : > { %2821 = vmatprep.subr.mxu0 %v3186_v0 }
 0x7e2   : > { %2822 = vmatpush3.msra.mxu0 %v3447_v57 }
 0x7e3   : > { %2823 = vmatprep.subr.mxu0 %v3186_v0 }
 0x7e4   : > { %2824 = vmatpush3.msra.mxu0 %v3451_v58 }
 0x7e5   : > { %2825 = vmatprep.subr.mxu0 %v3186_v0 }
 0x7e6   : > { %2826 = vmatpush3.msra.mxu0 %v3455_v59 }
 0x7e7   : > { %2827 = vmatprep.subr.mxu0 %v3186_v0 }
 0x7e8   : > { %2828 = vmatpush3.msra.mxu0 %v3459_v60 }
 0x7e9   : > { %2829 = vmatprep.subr.mxu0 %v3186_v0 }
 0x7ea   : > { %2830 = vmatpush3.msra.mxu0 %v3463_v61 }
 0x7eb   : > { %2831 = vmatprep.subr.mxu0 %v3186_v0 }
 0x7ec   : > { %2832 = vmatpush3.msra.mxu0 %v3467_v62 }
 0x7ed   : > { %2833 = vmatprep.subr.mxu0 %v3186_v0 }
 0x7ee   : > { %2834 = vmatpush3.msra.mxu0 %v3471_v63 }
 0x7ef   : > { %2835 = vmatprep.subr.mxu0 %v3186_v0 }
 0x7f0   : > { %2836 = vmatpush3.msra.mxu0 %v3475_v1 }
 0x7f1   : > { %2837 = vmatprep.subr.mxu0 %v3186_v0 }
 0x7f2   : > { %2838 = vmatpush3.msra.mxu0 %v3479_v2 }
 0x7f3   : > { %2839 = vmatprep.subr.mxu0 %v3186_v0 }
 0x7f4   : > { %2840 = vmatpush3.msra.mxu0 %v3518_v44 }
 0x895   : > { %v1735_v51 = vpop.f32.mrf.mxu0 }
 0x896   : > { %2780 = vmatpush3.msk.msra.mxu1 %vm746_vm1, %v1735_v51 }
 0x897   : > { %2782 = vmatmul.mubr.msk.f32.vlgmr.msra.gmra.mxu1 %vm890_vm3, %v3527_v47  ;;  %v2778_v52 = vpop.f32.mrf.mxu0  ;;  %2796 = vmatprep.subr.mxu1 %v3186_v0 }
 0x898   : > { %2784 = vmatprep.mubr.msk.f32.mxu1 %vm3187_vm0, %v3186_v0 }
 0x89b   : > { %2785 = vmatmul.mubr.msk.f32.gmra.mxu1 %vm890_vm3, %v3538_v50 }
 0x89c   : > { %2787 = vmatprep.mubr.msk.f32.mxu1 %vm3187_vm0, %v3186_v0 }
 0x89f   : > { %2788 = vmatmul.mubr.msk.f32.gmra.mxu1 %vm890_vm3, %v3551_v3 }
 0x8a0   : > { %2790 = vmatprep.mubr.msk.f32.mxu1 %vm3187_vm0, %v3186_v0 }
 0x8a3   : > { %2791 = vmatmul.mubr.msk.f32.gmra.mxu1 %vm890_vm3, %v3564_v4 }
 0x8a4   : > { %2793 = vmatprep.mubr.msk.f32.mxu1 %vm3187_vm0, %v3186_v0 }
 0x8a7   : > { %2794 = vmatmul.mubr.msk.f32.gmra.mxu1 %vm890_vm3, %v3577_v5 }
 0x8a8   : > { %2806 = vmatprep.mubr.msk.f32.mxu1 %vm3187_vm0, %v3186_v0 }
 0x957   : > { %v1808_v53 = vpop.f32.mrf.mxu1 }
 0x958   : > { %v1832_v21 = vsub.f32 %v3731_v12, %v1808_v53 }
 0x959   : > { %v2783_v54 = vpop.f32.mrf.mxu1 }
 0x95a   : > { %v1837_v25 = vmul.f32 %v1832_v21, %v1832_v21 }
 0x95b   : > { %v1813_v55 = vpop.f32.mrf.mxu1 }
 0x95c   : > { %v1833_v17 = vsub.f32 %v3727_v11, %v1813_v55 }
 0x95d   : > { %v2786_v56 = vpop.f32.mrf.mxu1 }
 0x95e   : > { %v1838_v24 = vmul.f32 %v1833_v17, %v1833_v17 }
 0x95f   : > { %v1818_v57 = vpop.f32.mrf.mxu1 }
 0x960   : > { %v1834_v2 = vsub.f32 %v3723_v10, %v1818_v57 }
 0x961   : > { %v2789_v58 = vpop.f32.mrf.mxu1 }
 0x962   : > { %v1839_v23 = vmul.f32 %v1834_v2, %v1834_v2 }
 0x963   : > { %v1823_v59 = vpop.f32.mrf.mxu1 }
 0x964   : > { %v1835_v62 = vsub.f32 %v3718_v7, %v1823_v59 }
 0x965   : > { %v2792_v60 = vpop.f32.mrf.mxu1 }
 0x966   : > { %v1840_v19 = vmul.f32 %v1835_v62, %v1835_v62 }
 0x967   : > { %v1828_v61 = vpop.f32.mrf.mxu1 }
 0x968   : > { %v3798_v63 = vsub.f32 %v3716_v49, %v1828_v61 }
 0x969   : > { %v2795_v1 = vpop.f32.mrf.mxu1 }
 0x96a   : > { %v1841_v44 = vmul.f32 %v3798_v63, %v3798_v63 }
 0x96c   : > { %2797 = vmatpush3.msk.msra.mxu1 %vm746_vm1, %v1841_v44 }
 0x96d   : > { %2798 = vmatprep.subr.mxu1 %v3186_v0 }
 0x96e   : > { %2799 = vmatpush3.msra.mxu1 %v1840_v19 }
 0x96f   : > { %2800 = vmatprep.subr.mxu1 %v3186_v0 }
 0x970   : > { %2801 = vmatpush3.msra.mxu1 %v1839_v23 }
 0x971   : > { %2802 = vmatprep.subr.mxu1 %v3186_v0 }
 0x972   : > { %2803 = vmatpush3.msra.mxu1 %v1838_v24 }
 0x973   : > { %2804 = vmatprep.subr.mxu1 %v3186_v0 }
 0x974   : > { %2805 = vmatpush3.msra.mxu1 %v1837_v25 }
 0x975   : > { %2807 = vmatmul.mubr.msk.f32.vlgmr.msra.gmra.mxu1 %vm742_vm2, %v3509_v43  ;;  %2844 = vmatprep.subr.mxu1 %v3186_v0 }
 0x976   : > { %2846 = vmatprep.mubr.msk.f32.mxu1 %vm3187_vm0, %v3186_v0 }
 0xa35   : > { %v1911_v26 = vpop.f32.mrf.mxu1 }
 0xa36   : > { %2842 = vmatmul.mubr.f32.vlgmr.msra.gmra.mxu0 %v1911_v26 }
 0xa37   : > { %v2808_v27 = vpop.f32.mrf.mxu1 }
 0xaf6   : > { %v1981_v28 = vpop.f32.mrf.mxu0 }
 0xaf7   : > { %v1982_v29 = vadd.f32 1e-05, %v1981_v28 }
 0xaf8   : > { %v2843_v30 = vpop.f32.mrf.mxu0 }
 0xaf9   : > { %2996 = vrsqrt.f32 %v1982_v29 }
 0xb06   : > { %v2997_v31 = vpop.eup %2996 }
 0xb07   : > { %2845 = vmatpush3.msk.msra.mxu1 %vm746_vm1, %v2997_v31 }
 0xb08   : > { %2847 = vmatmul.mubr.msk.f32.vlgmr.msra.gmra.mxu1 %vm890_vm3, %v3527_v47  ;;  %v2084_v47 = vld [vmem:[%s3383_s24] sm:$0xff] }
 0xb09   : > { %2849 = vmatprep.mubr.msk.f32.mxu1 %vm3187_vm0, %v3186_v0 }
 0xb0c   : > { %2850 = vmatmul.mubr.msk.f32.gmra.mxu1 %vm890_vm3, %v3538_v50 }
 0xb0d   : > { %2852 = vmatprep.mubr.msk.f32.mxu1 %vm3187_vm0, %v3186_v0 }
 0xb10   : > { %2853 = vmatmul.mubr.msk.f32.gmra.mxu1 %vm890_vm3, %v3551_v3  ;;  %v2085_v3 = vld [vmem:[%s3383_s24 + $0x8] sm:$0xff]  ;;  %s3108_s24 = sshll.u32 %s3188_s9, 4  ;;  %s3109_s24 = int_to_ptr.vmem [resolvable:$false] %s3108_s24 }
 0xb11   : > { %2855 = vmatprep.mubr.msk.f32.mxu1 %vm3187_vm0, %v3186_v0  ;;  %s3110_s20 = scalar_lea.vmem %s3109_s24, 1024  ;;  %p3111_p5 = scmp.lt.s32.totalorder %s3848_s3, %s3109_s24 }
 0xb12   : > { %p3112_p3 = scmp.lt.s32.totalorder %s3110_s20, %s3104_s14 }
 0xb14   : > { %2856 = vmatmul.mubr.msk.f32.gmra.mxu1 %vm890_vm3, %v3564_v4  ;;  %p3113_p7 = por %p3112_p3, %p3111_p5 }
 0xb15   : > { %2858 = vmatprep.mubr.msk.f32.mxu1 %vm3187_vm0, %v3186_v0 }
 0xb16   : > { %p3114_p9 = pnand %p3113_p7, %p3107_p0 }
 0xb18   : > { %2859 = vmatmul.mubr.msk.f32.gmra.mxu1 %vm890_vm3, %v3577_v5 }
 0xbc8   : > { %v2055_v43 = vpop.f32.mrf.mxu1 }
 0xbc9   : > { %v2079_v50 = vmul.f32 %v2055_v43, %v1832_v21 }
 0xbca   : > { %v2848_v32 = vpop.f32.mrf.mxu1 }
 0xbcb   : > { %v2086_v33 = vadd.f32 %v2084_v47, %v2079_v50 }
 0xbcc   : > { %v2060_v22 = vpop.f32.mrf.mxu1 }
 0xbcd   : > { %2088 = vst [vmem:[%s3838_s23] sm:$0xff] %v2086_v33  ;;  %v2080_v4 = vmul.f32 %v2060_v22, %v1833_v17 }
 0xbce   : > { %v2851_v0 = vpop.f32.mrf.mxu1 }
 0xbcf   : > { %v2087_v34 = vadd.f32 %v2085_v3, %v2080_v4 }
 0xbd0   : > { %v2065_v35 = vpop.f32.mrf.mxu1 }
 0xbd1   : > { %2089 = vst [vmem:[%s3838_s23 + $0x8] sm:$0xff] %v2087_v34  ;;  %v2081_v36 = vmul.f32 %v2065_v35, %v1834_v2 }
 0xbd2   : > { %v2854_v5 = vpop.f32.mrf.mxu1 }
 0xbd3   : > { %v2096_v39 = vrot.slane %v2081_v36, 2 }
 0xbd4   : > { %v2070_v37 = vpop.f32.mrf.mxu1 }
 0xbd5   : > { %v2082_v38 = vmul.f32 %v2070_v37, %v1835_v62 }
 0xbd6   : > { %v2857_v20 = vpop.f32.mrf.mxu1 }
 0xbd7   : > { %v2097_v41 = vrot.slane %v2082_v38, 2 }
 0xbd8   : > { %v2075_v18 = vpop.f32.mrf.mxu1 }
 0xbd9   : > { %v2098_v42 = vsel %vm2095_vm4, %v2096_v39, %v2097_v41  ;;  %v2083_v45 = vmul.f32 %v2075_v18, %v3798_v63 }
 0xbda   : > { %v2103_v46 = vadd.f32 %v2325_v40, %v2098_v42  ;;  %v2860_v15 = vpop.f32.mrf.mxu1 }
 0xbdb   : > { %v2099_v49 = vrot.slane %v2083_v45, 2 }
 0xbdc   : > { %2327 = vst [vmem:[%s3838_s23 + $0x10] sm:$0xff] %v2103_v46 }
 0xbdd   : > { %v2100_v16 = vsel %vm2095_vm4, %v2097_v41, %v2099_v49 }
 0xbde   : > { %v2104_v6 = vadd.f32 %v2326_v48, %v2100_v16 }
 0xbe0   : > { %2328 = vst [vmem:[%s3838_s23 + $0x18] sm:$0xff] %v2104_v6 }
 0xbe1   : > { %3117 = shalt.err (!%p3114_p9)
}
 0xbe2   : > { %s3118_s11 = scalar_lea.hbm %s3855_s10, 512  ;;  %s3122_s19 = scalar_lea.hbm %s3907_s8, 1024 }
 0xbe3   : > { %p3119_p1 = scmp.ne.s32.totalorder %s3855_s10, %s3118_s11  ;;  %p3123_p11 = scmp.lt.s32.totalorder %s3855_s10, %s3907_s8 }
 0xbe4   : > { %p3124_p13 = scmp.lt.s32.totalorder %s3122_s19, %s3118_s11 }
 0xbe5   : > { %p3120_p8 = pnand %p3119_p1, %p3933_p6 }
 0xbe6   : > { %p3125_p2 = por %p3124_p13, %p3123_p11 }
 0xbe7   : > { %p3121_p10 = pneg %p3120_p8 }
 0xbe9   : > { %p3126_p4 = pnand %p3125_p2, %p3121_p10 }
 0xbeb   : > { %3129 = shalt.err (!%p3126_p4)
}
 0xbec   : > { %s3189_s21 = smov 128   ;;  %s3190_s26 = smov 8  }
 0xbed   : > { %2875 = dma.vmem_to_hbm [thread:$0]  (%p3933_p6), %s3848_s3, 512, %s3855_s10, %s2109_s18, %s3189_s21, %s3189_s21, %s3190_s26  }
 0xbee PF: > { %s2138_s14 = sand.u32 1, %s3164_s27   ;;  %p3934_p12 = scmp.ne.s32.totalorder %s3917_s12, 0 }
 0xbef   : > { %p3935_p0 = scmp.ge.s32.totalorder %s3176_s30, 2  ;;  %s2139_s9 = scalar_lea.sflag [#allocation5], %s2138_s14 }
 0xbf1   : > { %p2892_p5 = pnand %p3935_p0, %p3934_p12 }
 0xbf3   : > { %p2893_p3 = pneg %p2892_p5 }
 0xbf5   : > { %3159 = dma.done.wait (%p2893_p3), %s2139_s9, 512  }
 0xbf6   : > { %3161 = vsyncadd (%p2893_p3), %s2139_s9, 4294966784  ;;  %p23_p7 = scmp.ge.s32.totalorder %s3319_s22, 4   ;;  %s3936_s27 = smov %s3168_s28 }
 0xbf7   : > { %s3937_s28 = smov %s3172_s29  ;;  %s3938_s29 = smov %s3329_s25 }
 0xbf8   : > { %s3939_s30 = smov %s3319_s22  ;;  %25 = sbr.rel (!%p23_p7) target bundleno = 10 (0xa), region = 111 }
 0xbfd   :  { %2144 = vsyncpa [#allocation4], 1 }
 0xbfe   :  { %2146 = vsyncpa [#allocation4 + $0x1], 1 }
 0xbff   :  { %2147 = vsyncpa [#allocation7], 1 }
 0xc00   :  { %2148 = vsyncpa [#allocation10], 1 }
 0xc01   :  { %2149 = vsyncpa [#allocation5], 1 }
 0xc02   :  { %2151 = vsyncpa [#allocation5 + $0x1], 1 }

</bundles_post_ra>
